<compile_context>
chip_gen: v5e
topology: v5e:2x2
jax: 0.10.0
libtpu: 0.0.40
codegen_flags: <defaults>
</compile_context>

<pallas_src>
import jax
import jax.numpy as jnp
from jax.experimental import pallas as pl
from jax.experimental.pallas import tpu as pltpu


def _tap_masks(H, W):
    """(9, H*W) f32 validity mask per conv tap t = ky*3 + kx (zero padding)."""
    p = jnp.arange(H * W)
    py, px = p // W, p % W
    rows = []
    for ky in range(3):
        for kx in range(3):
            dy, dx = ky - 1, kx - 1
            valid = ((py + dy >= 0) & (py + dy < H) &
                     (px + dx >= 0) & (px + dx < W))
            rows.append(valid)
    return jnp.stack(rows, axis=0).astype(jnp.float32)


def _make_kernel(H, W, NB):
    """Fused Block forward for one block of NB lane-batched samples.

    Refs seen by the kernel:
      x_ref  : (C, NB*HW)    input samples, channel-major, lanes = [s0 | s1 ...]
      w*_ref : (C, 9*C)      conv weights, tap-major (t = ky*3 + kx)
      g*,b*  : (C, HW)       LayerNorm gamma / beta (shared by every sample)
      m_ref  : (9, NB*HW)    0/1 boundary masks per tap (tiled per sample)
      o_ref  : (C, NB*HW)    output
      patches_ref : (9*C, NB*HW) VMEM scratch for the im2col block
    """
    HW = H * W

    def kernel(x_ref, w1_ref, w2_ref, g1_ref, b1_ref, g2_ref, b2_ref,
               m_ref, o_ref, patches_ref):
        C, L = x_ref.shape
        inv_n = 1.0 / (C * HW)          # per-sample LayerNorm element count

        def conv3x3(v, w_flat):
            # im2col via XLU lane-rolls + VPU masks; slabs land in VMEM scratch
            # (no concatenate value, no shift-matrix matmuls), then one
            # K = 9*C contraction on the MXU.
            for t in range(9):
                dy, dx = t // 3 - 1, t % 3 - 1
                if dy == 0 and dx == 0:
                    patches_ref[t * C:(t + 1) * C, :] = v
                else:
                    shift = (-(dy * W + dx)) % L
                    shifted = pltpu.roll(v, shift=shift, axis=1)
                    # mask kills both zero-padding taps and any roll wrap that
                    # crosses a sample boundary (those pixels are out of range).
                    patches_ref[t * C:(t + 1) * C, :] = (
                        shifted * m_ref[t:t + 1, :])
            return jnp.dot(w_flat, patches_ref[...],
                           preferred_element_type=jnp.float32)       # (C, L)

        def layernorm(v, g, b):
            # Per-sample LN over (C, H, W); two-pass (centered) variance.
            segs = []
            for n in range(NB):
                seg = v[:, n * HW:(n + 1) * HW]                      # (C, HW)
                row = jnp.sum(seg, axis=-1, keepdims=True)           # lane reduce
                mean = jnp.sum(row) * inv_n                          # sublane reduce
                cen = seg - mean
                row2 = jnp.sum(cen * cen, axis=-1, keepdims=True)
                var = jnp.sum(row2) * inv_n
                segs.append(cen * jax.lax.rsqrt(var + 1e-5) * g + b)
            return segs[0] if NB == 1 else jnp.concatenate(segs, axis=1)

        x = x_ref[...]

        # stage 1: relu(ln1(conv1(x)))
        y = conv3x3(x, w1_ref[...])
        y = jnp.maximum(layernorm(y, g1_ref[...], b1_ref[...]), 0.0)

        # stage 2: relu(ln2(conv2(y)) + identity)
        y = conv3x3(y, w2_ref[...])
        y = layernorm(y, g2_ref[...], b2_ref[...]) + x
        o_ref[...] = jnp.maximum(y, 0.0).astype(o_ref.dtype)

    return kernel


def block_forward(x_nchw, w1, g1, b1, w2, g2, b2, *, samples_per_block=None):
    """Pallas implementation of Block.forward (stride=1, no downsample).

    x_nchw : (N, C, H, W)        - PyTorch layout
    w1, w2 : (Cout, Cin, 3, 3)   - PyTorch conv weight layout (bias=False)
    g*, b* : (C, H, W)           - LayerNorm([C, H, W]) weight / bias
    samples_per_block : samples lane-batched per grid step.  Default = N
        (single step: best for 1-TensorCore v5e/v6e).  On v7x use N//2 so the
        "parallel" grid axis splits across both TensorCores.
    returns: (N, C, H, W)
    """
    N, C, H, W = x_nchw.shape
    HW = H * W
    if w1.shape != (C, C, 3, 3) or w2.shape != (C, C, 3, 3):
        raise NotImplementedError(
            "only the stride=1, Cin==Cout residual path is implemented")
    if C % 8 != 0 or HW % 128 != 0:
        raise NotImplementedError(
            "C must be a multiple of 8 and H*W a multiple of 128")

    NB = N if samples_per_block is None else samples_per_block
    assert N % NB == 0, (N, NB)
    num_blocks = N // NB
    L = NB * HW

    # (N, C, H, W) -> (num_blocks, C, NB*HW), lanes grouped per sample.
    x = (x_nchw.astype(jnp.float32)
         .reshape(num_blocks, NB, C, HW)
         .transpose(0, 2, 1, 3)
         .reshape(num_blocks, C, L))

    def prep_w(w):   # (Cout, Cin, 3, 3) -> (Cout, 9*Cin), tap-major t = ky*3+kx
        return (jnp.transpose(w.astype(jnp.float32), (0, 2, 3, 1))
                .reshape(C, 9 * C))

    def prep_ln(p):  # (C, H, W) -> (C, H*W)   (pure reshape)
        return p.astype(jnp.float32).reshape(C, HW)

    masks = jnp.tile(_tap_masks(H, W), (1, NB))        # (9, NB*HW), ~9*NB KB

    out = pl.pallas_call(
        _make_kernel(H, W, NB),
        out_shape=jax.ShapeDtypeStruct((num_blocks, C, L), jnp.float32),
        grid=(num_blocks,),
        in_specs=[
            pl.BlockSpec((None, C, L), lambda i: (i, 0, 0)),      # x block
            pl.BlockSpec((C, 9 * C), lambda i: (0, 0)),           # w1
            pl.BlockSpec((C, 9 * C), lambda i: (0, 0)),           # w2
            pl.BlockSpec((C, HW), lambda i: (0, 0)),              # g1
            pl.BlockSpec((C, HW), lambda i: (0, 0)),              # b1
            pl.BlockSpec((C, HW), lambda i: (0, 0)),              # g2
            pl.BlockSpec((C, HW), lambda i: (0, 0)),              # b2
            pl.BlockSpec((9, L), lambda i: (0, 0)),               # tap masks
        ],
        out_specs=pl.BlockSpec((None, C, L), lambda i: (i, 0, 0)),
        scratch_shapes=[pltpu.VMEM((9 * C, L), jnp.float32)],      # im2col block
        compiler_params=pltpu.CompilerParams(
            dimension_semantics=("parallel",)),
    )(x, prep_w(w1), prep_w(w2), prep_ln(g1), prep_ln(b1),
      prep_ln(g2), prep_ln(b2), masks)

    return (out.reshape(num_blocks, C, NB, HW)
            .transpose(0, 2, 1, 3)
            .reshape(N, C, H, W))


# ---------------- pure-JAX reference for verification ----------------
def _reference_forward(x, w1, g1, b1, w2, g2, b2):
    x = x.astype(jnp.float32)

    def conv(y, w):  # NCHW / OIHW, stride 1, SAME (pad 1), no bias
        return jax.lax.conv_general_dilated(
            y, w.astype(jnp.float32), window_strides=(1, 1),
            padding=((1, 1), (1, 1)),
            dimension_numbers=("NCHW", "OIHW", "NCHW"))

    def ln(y, g, b):  # per-sample LN over (C, H, W), biased var, eps=1e-5
        m = jnp.mean(y, axis=(1, 2, 3), keepdims=True)
        v = jnp.mean(jnp.square(y - m), axis=(1, 2, 3), keepdims=True)
        return (y - m) * jax.lax.rsqrt(v + 1e-5) * g + b

    h = jax.nn.relu(ln(conv(x, w1), g1, b1))
    h = ln(conv(h, w2), g2, b2) + x
    return jax.nn.relu(h)


if __name__ == "__main__":
    N, C, H, W = 2, 16, 16, 16   # in_channels == out_channels, stride=1
    key = jax.random.PRNGKey(0)
    k_x, k_w1, k_w2, k_g1, k_b1, k_g2, k_b2 = jax.random.split(key, 7)

    x = jax.random.normal(k_x, (N, C, H, W), jnp.float32)
    # conv weights: PyTorch shape (Cout, Cin, 3, 3), bias=False
    w1 = jax.random.normal(k_w1, (C, C, 3, 3), jnp.float32) * 0.1
    w2 = jax.random.normal(k_w2, (C, C, 3, 3), jnp.float32) * 0.1
    # LayerNorm([C, H, W]) params (near PyTorch default init)
    g1 = 1.0 + 0.1 * jax.random.normal(k_g1, (C, H, W), jnp.float32)
    b1 = 0.1 * jax.random.normal(k_b1, (C, H, W), jnp.float32)
    g2 = 1.0 + 0.1 * jax.random.normal(k_g2, (C, H, W), jnp.float32)
    b2 = 0.1 * jax.random.normal(k_b2, (C, H, W), jnp.float32)

    ref = jax.block_until_ready(_reference_forward(x, w1, g1, b1, w2, g2, b2))

    # Default: all samples lane-batched in one grid step (v5e/v6e friendly).
    out = jax.block_until_ready(block_forward(x, w1, g1, b1, w2, g2, b2))
    assert out.shape == (N, C, H, W), out.shape
    err = float(jnp.max(jnp.abs(out - ref)))
    assert err < 1e-3, f"lane-batched mismatch vs reference: {err}"

    # Per-sample grid (v7x-style 2-core "parallel" split) uses the same kernel.
    out2 = jax.block_until_ready(
        block_forward(x, w1, g1, b1, w2, g2, b2, samples_per_block=1))
    err2 = float(jnp.max(jnp.abs(out2 - ref)))
    assert err2 < 1e-3, f"per-sample-grid mismatch vs reference: {err2}"

    print("KERNEL_OK")
</pallas_src>

<mosaic_0001>
module attributes {stable_mosaic.version = 11 : i64} {
  func.func @kernel(%arg0: i32, %arg1: memref<1x16x512xf32, #tpu.memory_space<vmem>>, %arg2: memref<16x144xf32, #tpu.memory_space<vmem>>, %arg3: memref<16x144xf32, #tpu.memory_space<vmem>>, %arg4: memref<16x256xf32, #tpu.memory_space<vmem>>, %arg5: memref<16x256xf32, #tpu.memory_space<vmem>>, %arg6: memref<16x256xf32, #tpu.memory_space<vmem>>, %arg7: memref<16x256xf32, #tpu.memory_space<vmem>>, %arg8: memref<9x512xf32, #tpu.memory_space<vmem>>, %arg9: memref<1x16x512xf32, #tpu.memory_space<vmem>>, %arg10: memref<144x512xf32, #tpu.memory_space<vmem>>) attributes {dimension_semantics = [#tpu.dimension_semantics<parallel>], iteration_bounds = array<i64: 1>, scalar_prefetch = 0 : i64, scratch_operands = 1 : i64, tpu.core_type = #tpu.core_type<tc>, window_params = [{transform_indices = @transform_0, window_bounds = array<i64: 1, 16, 512>}, {pipeline_mode = #tpu.pipeline_mode<synchronous>, transform_indices = @transform_1, window_bounds = array<i64: 16, 144>}, {pipeline_mode = #tpu.pipeline_mode<synchronous>, transform_indices = @transform_2, window_bounds = array<i64: 16, 144>}, {pipeline_mode = #tpu.pipeline_mode<synchronous>, transform_indices = @transform_3, window_bounds = array<i64: 16, 256>}, {pipeline_mode = #tpu.pipeline_mode<synchronous>, transform_indices = @transform_4, window_bounds = array<i64: 16, 256>}, {pipeline_mode = #tpu.pipeline_mode<synchronous>, transform_indices = @transform_5, window_bounds = array<i64: 16, 256>}, {pipeline_mode = #tpu.pipeline_mode<synchronous>, transform_indices = @transform_6, window_bounds = array<i64: 16, 256>}, {pipeline_mode = #tpu.pipeline_mode<synchronous>, transform_indices = @transform_7, window_bounds = array<i64: 9, 512>}, {transform_indices = @transform_8, window_bounds = array<i64: 1, 16, 512>}]} {
    %c0 = arith.constant 0 : index
    %c0_0 = arith.constant 0 : index
    %c0_1 = arith.constant 0 : index
    %0 = vector.load %arg1[%c0, %c0_0, %c0_1] : memref<1x16x512xf32, #tpu.memory_space<vmem>>, vector<1x16x512xf32>
    %1 = vector.shape_cast %0 : vector<1x16x512xf32> to vector<16x512xf32>
    %c0_2 = arith.constant 0 : index
    %c0_3 = arith.constant 0 : index
    %2 = vector.load %arg2[%c0_2, %c0_3] : memref<16x144xf32, #tpu.memory_space<vmem>>, vector<16x144xf32>
    %c17_i32 = arith.constant 17 : i32
    %3 = tpu.dynamic_rotate %1 by %c17_i32 dim 1 : vector<16x512xf32>, i32 -> vector<16x512xf32>
    %c0_4 = arith.constant 0 : index
    %c0_5 = arith.constant 0 : index
    %4 = vector.load %arg8[%c0_4, %c0_5] : memref<9x512xf32, #tpu.memory_space<vmem>>, vector<1x512xf32>
    %5 = vector.broadcast %4 : vector<1x512xf32> to vector<16x512xf32>
    %6 = arith.mulf %3, %5 : vector<16x512xf32>
    %c0_6 = arith.constant 0 : index
    %c0_7 = arith.constant 0 : index
    %7 = vector.load %arg10[%c0_6, %c0_7] : memref<144x512xf32, #tpu.memory_space<vmem>>, vector<16x512xf32>
    tpu.vector_store %arg10[%c0_6, %c0_7], %6 {strides = array<i32>} : memref<144x512xf32, #tpu.memory_space<vmem>>, vector<16x512xf32>,
    %c16_i32 = arith.constant 16 : i32
    %8 = tpu.dynamic_rotate %1 by %c16_i32 dim 1 : vector<16x512xf32>, i32 -> vector<16x512xf32>
    %c1 = arith.constant 1 : index
    %c0_8 = arith.constant 0 : index
    %9 = vector.load %arg8[%c1, %c0_8] : memref<9x512xf32, #tpu.memory_space<vmem>>, vector<1x512xf32>
    %10 = vector.broadcast %9 : vector<1x512xf32> to vector<16x512xf32>
    %11 = arith.mulf %8, %10 : vector<16x512xf32>
    %c16 = arith.constant 16 : index
    %c0_9 = arith.constant 0 : index
    %12 = vector.load %arg10[%c16, %c0_9] : memref<144x512xf32, #tpu.memory_space<vmem>>, vector<16x512xf32>
    tpu.vector_store %arg10[%c16, %c0_9], %11 {strides = array<i32>} : memref<144x512xf32, #tpu.memory_space<vmem>>, vector<16x512xf32>,
    %c15_i32 = arith.constant 15 : i32
    %13 = tpu.dynamic_rotate %1 by %c15_i32 dim 1 : vector<16x512xf32>, i32 -> vector<16x512xf32>
    %c2 = arith.constant 2 : index
    %c0_10 = arith.constant 0 : index
    %14 = vector.load %arg8[%c2, %c0_10] : memref<9x512xf32, #tpu.memory_space<vmem>>, vector<1x512xf32>
    %15 = vector.broadcast %14 : vector<1x512xf32> to vector<16x512xf32>
    %16 = arith.mulf %13, %15 : vector<16x512xf32>
    %c32 = arith.constant 32 : index
    %c0_11 = arith.constant 0 : index
    %17 = vector.load %arg10[%c32, %c0_11] : memref<144x512xf32, #tpu.memory_space<vmem>>, vector<16x512xf32>
    tpu.vector_store %arg10[%c32, %c0_11], %16 {strides = array<i32>} : memref<144x512xf32, #tpu.memory_space<vmem>>, vector<16x512xf32>,
    %c1_i32 = arith.constant 1 : i32
    %18 = tpu.dynamic_rotate %1 by %c1_i32 dim 1 : vector<16x512xf32>, i32 -> vector<16x512xf32>
    %c3 = arith.constant 3 : index
    %c0_12 = arith.constant 0 : index
    %19 = vector.load %arg8[%c3, %c0_12] : memref<9x512xf32, #tpu.memory_space<vmem>>, vector<1x512xf32>
    %20 = vector.broadcast %19 : vector<1x512xf32> to vector<16x512xf32>
    %21 = arith.mulf %18, %20 : vector<16x512xf32>
    %c48 = arith.constant 48 : index
    %c0_13 = arith.constant 0 : index
    %22 = vector.load %arg10[%c48, %c0_13] : memref<144x512xf32, #tpu.memory_space<vmem>>, vector<16x512xf32>
    tpu.vector_store %arg10[%c48, %c0_13], %21 {strides = array<i32>} : memref<144x512xf32, #tpu.memory_space<vmem>>, vector<16x512xf32>,
    %c64 = arith.constant 64 : index
    %c0_14 = arith.constant 0 : index
    %23 = vector.load %arg10[%c64, %c0_14] : memref<144x512xf32, #tpu.memory_space<vmem>>, vector<16x512xf32>
    tpu.vector_store %arg10[%c64, %c0_14], %1 {strides = array<i32>} : memref<144x512xf32, #tpu.memory_space<vmem>>, vector<16x512xf32>,
    %c511_i32 = arith.constant 511 : i32
    %24 = tpu.dynamic_rotate %1 by %c511_i32 dim 1 : vector<16x512xf32>, i32 -> vector<16x512xf32>
    %c5 = arith.constant 5 : index
    %c0_15 = arith.constant 0 : index
    %25 = vector.load %arg8[%c5, %c0_15] : memref<9x512xf32, #tpu.memory_space<vmem>>, vector<1x512xf32>
    %26 = vector.broadcast %25 : vector<1x512xf32> to vector<16x512xf32>
    %27 = arith.mulf %24, %26 : vector<16x512xf32>
    %c80 = arith.constant 80 : index
    %c0_16 = arith.constant 0 : index
    %28 = vector.load %arg10[%c80, %c0_16] : memref<144x512xf32, #tpu.memory_space<vmem>>, vector<16x512xf32>
    tpu.vector_store %arg10[%c80, %c0_16], %27 {strides = array<i32>} : memref<144x512xf32, #tpu.memory_space<vmem>>, vector<16x512xf32>,
    %c497_i32 = arith.constant 497 : i32
    %29 = tpu.dynamic_rotate %1 by %c497_i32 dim 1 : vector<16x512xf32>, i32 -> vector<16x512xf32>
    %c6 = arith.constant 6 : index
    %c0_17 = arith.constant 0 : index
    %30 = vector.load %arg8[%c6, %c0_17] : memref<9x512xf32, #tpu.memory_space<vmem>>, vector<1x512xf32>
    %31 = vector.broadcast %30 : vector<1x512xf32> to vector<16x512xf32>
    %32 = arith.mulf %29, %31 : vector<16x512xf32>
    %c96 = arith.constant 96 : index
    %c0_18 = arith.constant 0 : index
    %33 = vector.load %arg10[%c96, %c0_18] : memref<144x512xf32, #tpu.memory_space<vmem>>, vector<16x512xf32>
    tpu.vector_store %arg10[%c96, %c0_18], %32 {strides = array<i32>} : memref<144x512xf32, #tpu.memory_space<vmem>>, vector<16x512xf32>,
    %c496_i32 = arith.constant 496 : i32
    %34 = tpu.dynamic_rotate %1 by %c496_i32 dim 1 : vector<16x512xf32>, i32 -> vector<16x512xf32>
    %c7 = arith.constant 7 : index
    %c0_19 = arith.constant 0 : index
    %35 = vector.load %arg8[%c7, %c0_19] : memref<9x512xf32, #tpu.memory_space<vmem>>, vector<1x512xf32>
    %36 = vector.broadcast %35 : vector<1x512xf32> to vector<16x512xf32>
    %37 = arith.mulf %34, %36 : vector<16x512xf32>
    %c112 = arith.constant 112 : index
    %c0_20 = arith.constant 0 : index
    %38 = vector.load %arg10[%c112, %c0_20] : memref<144x512xf32, #tpu.memory_space<vmem>>, vector<16x512xf32>
    tpu.vector_store %arg10[%c112, %c0_20], %37 {strides = array<i32>} : memref<144x512xf32, #tpu.memory_space<vmem>>, vector<16x512xf32>,
    %c495_i32 = arith.constant 495 : i32
    %39 = tpu.dynamic_rotate %1 by %c495_i32 dim 1 : vector<16x512xf32>, i32 -> vector<16x512xf32>
    %c8 = arith.constant 8 : index
    %c0_21 = arith.constant 0 : index
    %40 = vector.load %arg8[%c8, %c0_21] : memref<9x512xf32, #tpu.memory_space<vmem>>, vector<1x512xf32>
    %41 = vector.broadcast %40 : vector<1x512xf32> to vector<16x512xf32>
    %42 = arith.mulf %39, %41 : vector<16x512xf32>
    %c128 = arith.constant 128 : index
    %c0_22 = arith.constant 0 : index
    %43 = vector.load %arg10[%c128, %c0_22] : memref<144x512xf32, #tpu.memory_space<vmem>>, vector<16x512xf32>
    tpu.vector_store %arg10[%c128, %c0_22], %42 {strides = array<i32>} : memref<144x512xf32, #tpu.memory_space<vmem>>, vector<16x512xf32>,
    %c0_23 = arith.constant 0 : index
    %c0_24 = arith.constant 0 : index
    %44 = vector.load %arg10[%c0_23, %c0_24] : memref<144x512xf32, #tpu.memory_space<vmem>>, vector<144x512xf32>
    %cst = arith.constant dense<0.000000e+00> : vector<16x512xf32>
    %45 = tpu.matmul %2, %44, %cst {dimension_numbers = #tpu.dot_dimension_numbers<[1], [0], [0], [1], [0, 0, 1, 1], [], []>} : vector<16x144xf32>, vector<144x512xf32>, vector<16x512xf32> -> vector<16x512xf32>
    %c0_25 = arith.constant 0 : index
    %c0_26 = arith.constant 0 : index
    %46 = vector.load %arg4[%c0_25, %c0_26] : memref<16x256xf32, #tpu.memory_space<vmem>>, vector<16x256xf32>
    %c0_27 = arith.constant 0 : index
    %c0_28 = arith.constant 0 : index
    %47 = vector.load %arg5[%c0_27, %c0_28] : memref<16x256xf32, #tpu.memory_space<vmem>>, vector<16x256xf32>
    %48 = vector.extract_strided_slice %45 {offsets = [0, 0], sizes = [16, 256], strides = [1, 1]} : vector<16x512xf32> to vector<16x256xf32>
    %cst_29 = arith.constant dense<0.000000e+00> : vector<16xf32>
    %49 = vector.multi_reduction <add>, %48, %cst_29 [1] : vector<16x256xf32> to vector<16xf32>
    %50 = vector.shape_cast %49 : vector<16xf32> to vector<16x1xf32>
    %51 = vector.shape_cast %50 : vector<16x1xf32> to vector<1x16x1xf32>
    %cst_30 = arith.constant dense<0.000000e+00> : vector<1xf32>
    %52 = vector.multi_reduction <add>, %51, %cst_30 [1, 2] : vector<1x16x1xf32> to vector<1xf32>
    %53 = vector.shape_cast %52 : vector<1xf32> to vector<1x1x1xf32>
    %54 = vector.extract %53[0, 0, 0] : f32 from vector<1x1x1xf32>
    %cst_31 = arith.constant 2.44140625E-4 : f32
    %55 = arith.mulf %54, %cst_31 : f32
    %56 = vector.broadcast %55 : f32 to vector<16x256xf32>
    %57 = arith.subf %48, %56 : vector<16x256xf32>
    %58 = arith.mulf %57, %57 : vector<16x256xf32>
    %cst_32 = arith.constant dense<0.000000e+00> : vector<16xf32>
    %59 = vector.multi_reduction <add>, %58, %cst_32 [1] : vector<16x256xf32> to vector<16xf32>
    %60 = vector.shape_cast %59 : vector<16xf32> to vector<16x1xf32>
    %61 = vector.shape_cast %60 : vector<16x1xf32> to vector<1x16x1xf32>
    %cst_33 = arith.constant dense<0.000000e+00> : vector<1xf32>
    %62 = vector.multi_reduction <add>, %61, %cst_33 [1, 2] : vector<1x16x1xf32> to vector<1xf32>
    %63 = vector.shape_cast %62 : vector<1xf32> to vector<1x1x1xf32>
    %64 = vector.extract %63[0, 0, 0] : f32 from vector<1x1x1xf32>
    %cst_34 = arith.constant 2.44140625E-4 : f32
    %65 = arith.mulf %64, %cst_34 : f32
    %cst_35 = arith.constant 9.99999974E-6 : f32
    %66 = arith.addf %65, %cst_35 : f32
    %67 = math.rsqrt %66 : f32
    %68 = vector.broadcast %67 : f32 to vector<16x256xf32>
    %69 = arith.mulf %57, %68 : vector<16x256xf32>
    %70 = arith.mulf %69, %46 : vector<16x256xf32>
    %71 = arith.addf %70, %47 : vector<16x256xf32>
    %72 = vector.extract_strided_slice %45 {offsets = [0, 256], sizes = [16, 256], strides = [1, 1]} : vector<16x512xf32> to vector<16x256xf32>
    %cst_36 = arith.constant dense<0.000000e+00> : vector<16xf32>
    %73 = vector.multi_reduction <add>, %72, %cst_36 [1] : vector<16x256xf32> to vector<16xf32>
    %74 = vector.shape_cast %73 : vector<16xf32> to vector<16x1xf32>
    %75 = vector.shape_cast %74 : vector<16x1xf32> to vector<1x16x1xf32>
    %cst_37 = arith.constant dense<0.000000e+00> : vector<1xf32>
    %76 = vector.multi_reduction <add>, %75, %cst_37 [1, 2] : vector<1x16x1xf32> to vector<1xf32>
    %77 = vector.shape_cast %76 : vector<1xf32> to vector<1x1x1xf32>
    %78 = vector.extract %77[0, 0, 0] : f32 from vector<1x1x1xf32>
    %cst_38 = arith.constant 2.44140625E-4 : f32
    %79 = arith.mulf %78, %cst_38 : f32
    %80 = vector.broadcast %79 : f32 to vector<16x256xf32>
    %81 = arith.subf %72, %80 : vector<16x256xf32>
    %82 = arith.mulf %81, %81 : vector<16x256xf32>
    %cst_39 = arith.constant dense<0.000000e+00> : vector<16xf32>
    %83 = vector.multi_reduction <add>, %82, %cst_39 [1] : vector<16x256xf32> to vector<16xf32>
    %84 = vector.shape_cast %83 : vector<16xf32> to vector<16x1xf32>
    %85 = vector.shape_cast %84 : vector<16x1xf32> to vector<1x16x1xf32>
    %cst_40 = arith.constant dense<0.000000e+00> : vector<1xf32>
    %86 = vector.multi_reduction <add>, %85, %cst_40 [1, 2] : vector<1x16x1xf32> to vector<1xf32>
    %87 = vector.shape_cast %86 : vector<1xf32> to vector<1x1x1xf32>
    %88 = vector.extract %87[0, 0, 0] : f32 from vector<1x1x1xf32>
    %cst_41 = arith.constant 2.44140625E-4 : f32
    %89 = arith.mulf %88, %cst_41 : f32
    %cst_42 = arith.constant 9.99999974E-6 : f32
    %90 = arith.addf %89, %cst_42 : f32
    %91 = math.rsqrt %90 : f32
    %92 = vector.broadcast %91 : f32 to vector<16x256xf32>
    %93 = arith.mulf %81, %92 : vector<16x256xf32>
    %94 = arith.mulf %93, %46 : vector<16x256xf32>
    %95 = arith.addf %94, %47 : vector<16x256xf32>
    %96 = tpu.concatenate %71, %95 in 1 : vector<16x256xf32>, vector<16x256xf32> -> vector<16x512xf32>
    %cst_43 = arith.constant 0.000000e+00 : f32
    %97 = vector.broadcast %cst_43 : f32 to vector<16x512xf32>
    %98 = arith.maximumf %96, %97 : vector<16x512xf32>
    %c0_44 = arith.constant 0 : index
    %c0_45 = arith.constant 0 : index
    %99 = vector.load %arg3[%c0_44, %c0_45] : memref<16x144xf32, #tpu.memory_space<vmem>>, vector<16x144xf32>
    %c17_i32_46 = arith.constant 17 : i32
    %100 = tpu.dynamic_rotate %98 by %c17_i32_46 dim 1 : vector<16x512xf32>, i32 -> vector<16x512xf32>
    %c0_47 = arith.constant 0 : index
    %c0_48 = arith.constant 0 : index
    %101 = vector.load %arg8[%c0_47, %c0_48] : memref<9x512xf32, #tpu.memory_space<vmem>>, vector<1x512xf32>
    %102 = vector.broadcast %101 : vector<1x512xf32> to vector<16x512xf32>
    %103 = arith.mulf %100, %102 : vector<16x512xf32>
    %c0_49 = arith.constant 0 : index
    %c0_50 = arith.constant 0 : index
    %104 = vector.load %arg10[%c0_49, %c0_50] : memref<144x512xf32, #tpu.memory_space<vmem>>, vector<16x512xf32>
    tpu.vector_store %arg10[%c0_49, %c0_50], %103 {strides = array<i32>} : memref<144x512xf32, #tpu.memory_space<vmem>>, vector<16x512xf32>,
    %c16_i32_51 = arith.constant 16 : i32
    %105 = tpu.dynamic_rotate %98 by %c16_i32_51 dim 1 : vector<16x512xf32>, i32 -> vector<16x512xf32>
    %c1_52 = arith.constant 1 : index
    %c0_53 = arith.constant 0 : index
    %106 = vector.load %arg8[%c1_52, %c0_53] : memref<9x512xf32, #tpu.memory_space<vmem>>, vector<1x512xf32>
    %107 = vector.broadcast %106 : vector<1x512xf32> to vector<16x512xf32>
    %108 = arith.mulf %105, %107 : vector<16x512xf32>
    %c16_54 = arith.constant 16 : index
    %c0_55 = arith.constant 0 : index
    %109 = vector.load %arg10[%c16_54, %c0_55] : memref<144x512xf32, #tpu.memory_space<vmem>>, vector<16x512xf32>
    tpu.vector_store %arg10[%c16_54, %c0_55], %108 {strides = array<i32>} : memref<144x512xf32, #tpu.memory_space<vmem>>, vector<16x512xf32>,
    %c15_i32_56 = arith.constant 15 : i32
    %110 = tpu.dynamic_rotate %98 by %c15_i32_56 dim 1 : vector<16x512xf32>, i32 -> vector<16x512xf32>
    %c2_57 = arith.constant 2 : index
    %c0_58 = arith.constant 0 : index
    %111 = vector.load %arg8[%c2_57, %c0_58] : memref<9x512xf32, #tpu.memory_space<vmem>>, vector<1x512xf32>
    %112 = vector.broadcast %111 : vector<1x512xf32> to vector<16x512xf32>
    %113 = arith.mulf %110, %112 : vector<16x512xf32>
    %c32_59 = arith.constant 32 : index
    %c0_60 = arith.constant 0 : index
    %114 = vector.load %arg10[%c32_59, %c0_60] : memref<144x512xf32, #tpu.memory_space<vmem>>, vector<16x512xf32>
    tpu.vector_store %arg10[%c32_59, %c0_60], %113 {strides = array<i32>} : memref<144x512xf32, #tpu.memory_space<vmem>>, vector<16x512xf32>,
    %c1_i32_61 = arith.constant 1 : i32
    %115 = tpu.dynamic_rotate %98 by %c1_i32_61 dim 1 : vector<16x512xf32>, i32 -> vector<16x512xf32>
    %c3_62 = arith.constant 3 : index
    %c0_63 = arith.constant 0 : index
    %116 = vector.load %arg8[%c3_62, %c0_63] : memref<9x512xf32, #tpu.memory_space<vmem>>, vector<1x512xf32>
    %117 = vector.broadcast %116 : vector<1x512xf32> to vector<16x512xf32>
    %118 = arith.mulf %115, %117 : vector<16x512xf32>
    %c48_64 = arith.constant 48 : index
    %c0_65 = arith.constant 0 : index
    %119 = vector.load %arg10[%c48_64, %c0_65] : memref<144x512xf32, #tpu.memory_space<vmem>>, vector<16x512xf32>
    tpu.vector_store %arg10[%c48_64, %c0_65], %118 {strides = array<i32>} : memref<144x512xf32, #tpu.memory_space<vmem>>, vector<16x512xf32>,
    %c64_66 = arith.constant 64 : index
    %c0_67 = arith.constant 0 : index
    %120 = vector.load %arg10[%c64_66, %c0_67] : memref<144x512xf32, #tpu.memory_space<vmem>>, vector<16x512xf32>
    tpu.vector_store %arg10[%c64_66, %c0_67], %98 {strides = array<i32>} : memref<144x512xf32, #tpu.memory_space<vmem>>, vector<16x512xf32>,
    %c511_i32_68 = arith.constant 511 : i32
    %121 = tpu.dynamic_rotate %98 by %c511_i32_68 dim 1 : vector<16x512xf32>, i32 -> vector<16x512xf32>
    %c5_69 = arith.constant 5 : index
    %c0_70 = arith.constant 0 : index
    %122 = vector.load %arg8[%c5_69, %c0_70] : memref<9x512xf32, #tpu.memory_space<vmem>>, vector<1x512xf32>
    %123 = vector.broadcast %122 : vector<1x512xf32> to vector<16x512xf32>
    %124 = arith.mulf %121, %123 : vector<16x512xf32>
    %c80_71 = arith.constant 80 : index
    %c0_72 = arith.constant 0 : index
    %125 = vector.load %arg10[%c80_71, %c0_72] : memref<144x512xf32, #tpu.memory_space<vmem>>, vector<16x512xf32>
    tpu.vector_store %arg10[%c80_71, %c0_72], %124 {strides = array<i32>} : memref<144x512xf32, #tpu.memory_space<vmem>>, vector<16x512xf32>,
    %c497_i32_73 = arith.constant 497 : i32
    %126 = tpu.dynamic_rotate %98 by %c497_i32_73 dim 1 : vector<16x512xf32>, i32 -> vector<16x512xf32>
    %c6_74 = arith.constant 6 : index
    %c0_75 = arith.constant 0 : index
    %127 = vector.load %arg8[%c6_74, %c0_75] : memref<9x512xf32, #tpu.memory_space<vmem>>, vector<1x512xf32>
    %128 = vector.broadcast %127 : vector<1x512xf32> to vector<16x512xf32>
    %129 = arith.mulf %126, %128 : vector<16x512xf32>
    %c96_76 = arith.constant 96 : index
    %c0_77 = arith.constant 0 : index
    %130 = vector.load %arg10[%c96_76, %c0_77] : memref<144x512xf32, #tpu.memory_space<vmem>>, vector<16x512xf32>
    tpu.vector_store %arg10[%c96_76, %c0_77], %129 {strides = array<i32>} : memref<144x512xf32, #tpu.memory_space<vmem>>, vector<16x512xf32>,
    %c496_i32_78 = arith.constant 496 : i32
    %131 = tpu.dynamic_rotate %98 by %c496_i32_78 dim 1 : vector<16x512xf32>, i32 -> vector<16x512xf32>
    %c7_79 = arith.constant 7 : index
    %c0_80 = arith.constant 0 : index
    %132 = vector.load %arg8[%c7_79, %c0_80] : memref<9x512xf32, #tpu.memory_space<vmem>>, vector<1x512xf32>
    %133 = vector.broadcast %132 : vector<1x512xf32> to vector<16x512xf32>
    %134 = arith.mulf %131, %133 : vector<16x512xf32>
    %c112_81 = arith.constant 112 : index
    %c0_82 = arith.constant 0 : index
    %135 = vector.load %arg10[%c112_81, %c0_82] : memref<144x512xf32, #tpu.memory_space<vmem>>, vector<16x512xf32>
    tpu.vector_store %arg10[%c112_81, %c0_82], %134 {strides = array<i32>} : memref<144x512xf32, #tpu.memory_space<vmem>>, vector<16x512xf32>,
    %c495_i32_83 = arith.constant 495 : i32
    %136 = tpu.dynamic_rotate %98 by %c495_i32_83 dim 1 : vector<16x512xf32>, i32 -> vector<16x512xf32>
    %c8_84 = arith.constant 8 : index
    %c0_85 = arith.constant 0 : index
    %137 = vector.load %arg8[%c8_84, %c0_85] : memref<9x512xf32, #tpu.memory_space<vmem>>, vector<1x512xf32>
    %138 = vector.broadcast %137 : vector<1x512xf32> to vector<16x512xf32>
    %139 = arith.mulf %136, %138 : vector<16x512xf32>
    %c128_86 = arith.constant 128 : index
    %c0_87 = arith.constant 0 : index
    %140 = vector.load %arg10[%c128_86, %c0_87] : memref<144x512xf32, #tpu.memory_space<vmem>>, vector<16x512xf32>
    tpu.vector_store %arg10[%c128_86, %c0_87], %139 {strides = array<i32>} : memref<144x512xf32, #tpu.memory_space<vmem>>, vector<16x512xf32>,
    %c0_88 = arith.constant 0 : index
    %c0_89 = arith.constant 0 : index
    %141 = vector.load %arg10[%c0_88, %c0_89] : memref<144x512xf32, #tpu.memory_space<vmem>>, vector<144x512xf32>
    %cst_90 = arith.constant dense<0.000000e+00> : vector<16x512xf32>
    %142 = tpu.matmul %99, %141, %cst_90 {dimension_numbers = #tpu.dot_dimension_numbers<[1], [0], [0], [1], [0, 0, 1, 1], [], []>} : vector<16x144xf32>, vector<144x512xf32>, vector<16x512xf32> -> vector<16x512xf32>
    %c0_91 = arith.constant 0 : index
    %c0_92 = arith.constant 0 : index
    %143 = vector.load %arg6[%c0_91, %c0_92] : memref<16x256xf32, #tpu.memory_space<vmem>>, vector<16x256xf32>
    %c0_93 = arith.constant 0 : index
    %c0_94 = arith.constant 0 : index
    %144 = vector.load %arg7[%c0_93, %c0_94] : memref<16x256xf32, #tpu.memory_space<vmem>>, vector<16x256xf32>
    %145 = vector.extract_strided_slice %142 {offsets = [0, 0], sizes = [16, 256], strides = [1, 1]} : vector<16x512xf32> to vector<16x256xf32>
    %cst_95 = arith.constant dense<0.000000e+00> : vector<16xf32>
    %146 = vector.multi_reduction <add>, %145, %cst_95 [1] : vector<16x256xf32> to vector<16xf32>
    %147 = vector.shape_cast %146 : vector<16xf32> to vector<16x1xf32>
    %148 = vector.shape_cast %147 : vector<16x1xf32> to vector<1x16x1xf32>
    %cst_96 = arith.constant dense<0.000000e+00> : vector<1xf32>
    %149 = vector.multi_reduction <add>, %148, %cst_96 [1, 2] : vector<1x16x1xf32> to vector<1xf32>
    %150 = vector.shape_cast %149 : vector<1xf32> to vector<1x1x1xf32>
    %151 = vector.extract %150[0, 0, 0] : f32 from vector<1x1x1xf32>
    %cst_97 = arith.constant 2.44140625E-4 : f32
    %152 = arith.mulf %151, %cst_97 : f32
    %153 = vector.broadcast %152 : f32 to vector<16x256xf32>
    %154 = arith.subf %145, %153 : vector<16x256xf32>
    %155 = arith.mulf %154, %154 : vector<16x256xf32>
    %cst_98 = arith.constant dense<0.000000e+00> : vector<16xf32>
    %156 = vector.multi_reduction <add>, %155, %cst_98 [1] : vector<16x256xf32> to vector<16xf32>
    %157 = vector.shape_cast %156 : vector<16xf32> to vector<16x1xf32>
    %158 = vector.shape_cast %157 : vector<16x1xf32> to vector<1x16x1xf32>
    %cst_99 = arith.constant dense<0.000000e+00> : vector<1xf32>
    %159 = vector.multi_reduction <add>, %158, %cst_99 [1, 2] : vector<1x16x1xf32> to vector<1xf32>
    %160 = vector.shape_cast %159 : vector<1xf32> to vector<1x1x1xf32>
    %161 = vector.extract %160[0, 0, 0] : f32 from vector<1x1x1xf32>
    %cst_100 = arith.constant 2.44140625E-4 : f32
    %162 = arith.mulf %161, %cst_100 : f32
    %cst_101 = arith.constant 9.99999974E-6 : f32
    %163 = arith.addf %162, %cst_101 : f32
    %164 = math.rsqrt %163 : f32
    %165 = vector.broadcast %164 : f32 to vector<16x256xf32>
    %166 = arith.mulf %154, %165 : vector<16x256xf32>
    %167 = arith.mulf %166, %143 : vector<16x256xf32>
    %168 = arith.addf %167, %144 : vector<16x256xf32>
    %169 = vector.extract_strided_slice %142 {offsets = [0, 256], sizes = [16, 256], strides = [1, 1]} : vector<16x512xf32> to vector<16x256xf32>
    %cst_102 = arith.constant dense<0.000000e+00> : vector<16xf32>
    %170 = vector.multi_reduction <add>, %169, %cst_102 [1] : vector<16x256xf32> to vector<16xf32>
    %171 = vector.shape_cast %170 : vector<16xf32> to vector<16x1xf32>
    %172 = vector.shape_cast %171 : vector<16x1xf32> to vector<1x16x1xf32>
    %cst_103 = arith.constant dense<0.000000e+00> : vector<1xf32>
    %173 = vector.multi_reduction <add>, %172, %cst_103 [1, 2] : vector<1x16x1xf32> to vector<1xf32>
    %174 = vector.shape_cast %173 : vector<1xf32> to vector<1x1x1xf32>
    %175 = vector.extract %174[0, 0, 0] : f32 from vector<1x1x1xf32>
    %cst_104 = arith.constant 2.44140625E-4 : f32
    %176 = arith.mulf %175, %cst_104 : f32
    %177 = vector.broadcast %176 : f32 to vector<16x256xf32>
    %178 = arith.subf %169, %177 : vector<16x256xf32>
    %179 = arith.mulf %178, %178 : vector<16x256xf32>
    %cst_105 = arith.constant dense<0.000000e+00> : vector<16xf32>
    %180 = vector.multi_reduction <add>, %179, %cst_105 [1] : vector<16x256xf32> to vector<16xf32>
    %181 = vector.shape_cast %180 : vector<16xf32> to vector<16x1xf32>
    %182 = vector.shape_cast %181 : vector<16x1xf32> to vector<1x16x1xf32>
    %cst_106 = arith.constant dense<0.000000e+00> : vector<1xf32>
    %183 = vector.multi_reduction <add>, %182, %cst_106 [1, 2] : vector<1x16x1xf32> to vector<1xf32>
    %184 = vector.shape_cast %183 : vector<1xf32> to vector<1x1x1xf32>
    %185 = vector.extract %184[0, 0, 0] : f32 from vector<1x1x1xf32>
    %cst_107 = arith.constant 2.44140625E-4 : f32
    %186 = arith.mulf %185, %cst_107 : f32
    %cst_108 = arith.constant 9.99999974E-6 : f32
    %187 = arith.addf %186, %cst_108 : f32
    %188 = math.rsqrt %187 : f32
    %189 = vector.broadcast %188 : f32 to vector<16x256xf32>
    %190 = arith.mulf %178, %189 : vector<16x256xf32>
    %191 = arith.mulf %190, %143 : vector<16x256xf32>
    %192 = arith.addf %191, %144 : vector<16x256xf32>
    %193 = tpu.concatenate %168, %192 in 1 : vector<16x256xf32>, vector<16x256xf32> -> vector<16x512xf32>
    %194 = arith.addf %193, %1 : vector<16x512xf32>
    %cst_109 = arith.constant 0.000000e+00 : f32
    %195 = vector.broadcast %cst_109 : f32 to vector<16x512xf32>
    %196 = arith.maximumf %194, %195 : vector<16x512xf32>
    %c0_110 = arith.constant 0 : index
    %c0_111 = arith.constant 0 : index
    %c0_112 = arith.constant 0 : index
    %197 = vector.load %arg9[%c0_110, %c0_111, %c0_112] : memref<1x16x512xf32, #tpu.memory_space<vmem>>, vector<1x16x512xf32>
    %198 = vector.shape_cast %197 : vector<1x16x512xf32> to vector<16x512xf32>
    %199 = vector.shape_cast %196 : vector<16x512xf32> to vector<1x16x512xf32>
    tpu.vector_store %arg9[%c0_110, %c0_111, %c0_112], %199 {strides = array<i32>} : memref<1x16x512xf32, #tpu.memory_space<vmem>>, vector<1x16x512xf32>,
    return
  }
  func.func @transform_0(%arg0: i32) -> (i32, i32, i32) {
    %c0_i32 = arith.constant 0 : i32
    %c0_i32_0 = arith.constant 0 : i32
    %c0_i32_1 = arith.constant 0 : i32
    return %arg0, %c0_i32, %c0_i32_0 : i32, i32, i32
  }
  func.func @transform_1(%arg0: i32) -> (i32, i32) {
    %c0_i32 = arith.constant 0 : i32
    %c0_i32_0 = arith.constant 0 : i32
    %c0_i32_1 = arith.constant 0 : i32
    return %c0_i32, %c0_i32_0 : i32, i32
  }
  func.func @transform_2(%arg0: i32) -> (i32, i32) {
    %c0_i32 = arith.constant 0 : i32
    %c0_i32_0 = arith.constant 0 : i32
    %c0_i32_1 = arith.constant 0 : i32
    return %c0_i32, %c0_i32_0 : i32, i32
  }
  func.func @transform_3(%arg0: i32) -> (i32, i32) {
    %c0_i32 = arith.constant 0 : i32
    %c0_i32_0 = arith.constant 0 : i32
    %c0_i32_1 = arith.constant 0 : i32
    return %c0_i32, %c0_i32_0 : i32, i32
  }
  func.func @transform_4(%arg0: i32) -> (i32, i32) {
    %c0_i32 = arith.constant 0 : i32
    %c0_i32_0 = arith.constant 0 : i32
    %c0_i32_1 = arith.constant 0 : i32
    return %c0_i32, %c0_i32_0 : i32, i32
  }
  func.func @transform_5(%arg0: i32) -> (i32, i32) {
    %c0_i32 = arith.constant 0 : i32
    %c0_i32_0 = arith.constant 0 : i32
    %c0_i32_1 = arith.constant 0 : i32
    return %c0_i32, %c0_i32_0 : i32, i32
  }
  func.func @transform_6(%arg0: i32) -> (i32, i32) {
    %c0_i32 = arith.constant 0 : i32
    %c0_i32_0 = arith.constant 0 : i32
    %c0_i32_1 = arith.constant 0 : i32
    return %c0_i32, %c0_i32_0 : i32, i32
  }
  func.func @transform_7(%arg0: i32) -> (i32, i32) {
    %c0_i32 = arith.constant 0 : i32
    %c0_i32_0 = arith.constant 0 : i32
    %c0_i32_1 = arith.constant 0 : i32
    return %c0_i32, %c0_i32_0 : i32, i32
  }
  func.func @transform_8(%arg0: i32) -> (i32, i32, i32) {
    %c0_i32 = arith.constant 0 : i32
    %c0_i32_0 = arith.constant 0 : i32
    %c0_i32_1 = arith.constant 0 : i32
    return %arg0, %c0_i32, %c0_i32_0 : i32, i32, i32
  }
}

</mosaic_0001>

<bundles_post_ra>
// kernel: tpu_custom_call.1
= control target key start
LH: loop header
LB: loop body
LE: loop exit
PB: predicated region body
PF: predicated region fallthrough
CT: control target
= control target key end

     0   :  { %13 = vsyncpa [#allocation4], 0  ;;  %s3562_s0 = inlined_call_operand.hbm [shape: f32[1,16,512], index: 0, kind: input, shape index: {}]   ;;  %s3563_s1 = inlined_call_operand.hbm [shape: f32[16,144], index: 1, kind: input, shape index: {}]   ;;  %s3564_s2 = inlined_call_operand.hbm [shape: f32[16,144], index: 2, kind: input, shape index: {}]   ;;  %s3565_s3 = inlined_call_operand.hbm [shape: f32[16,256], index: 3, kind: input, shape index: {}]   ;;  %s3566_s4 = inlined_call_operand.hbm [shape: f32[16,256], index: 4, kind: input, shape index: {}]   ;;  %s3567_s5 = inlined_call_operand.hbm [shape: f32[16,256], index: 5, kind: input, shape index: {}]   ;;  %s3568_s6 = inlined_call_operand.hbm [shape: f32[16,256], index: 6, kind: input, shape index: {}]   ;;  %s3569_s7 = inlined_call_operand.hbm [shape: f32[9,512], index: 7, kind: input, shape index: {}]   ;;  %s3570_s8 = inlined_call_operand.hbm [shape: f32[1,16,512], index: 8, kind: output, shape index: {}]  }
   0x1   :  { %14 = vsyncpa [#allocation7], 0 }
   0x2   :  { %15 = vsyncpa [#allocation10], 0 }
   0x3   :  { %16 = vsyncpa [#allocation13], 0 }
   0x4   :  { %17 = vsyncpa [#allocation16], 0  ;;  %s36_s29 = sshll.u32 %s3563_s1, 4  ;;  %s37_s29 = int_to_ptr.hbm [resolvable:$true] %s36_s29 }
   0x5   :  { %18 = vsyncpa [#allocation5], 0  ;;  %s2201_s30 = smov [#allocation6]   ;;  %s62_s12 = sshll.u32 %s3565_s3, 4  ;;  %s63_s12 = int_to_ptr.hbm [resolvable:$true] %s62_s12 }
   0x6   :  { %s38_s9 = sshll.u32 %s2201_s30, 4  ;;  %s2202_s13 = smov 256   ;;  %s39_s9 = int_to_ptr.vmem [resolvable:$true] %s38_s9 }
   0x7   :  { %s2203_s14 = smov 16   ;;  %s2204_s15 = smov [#allocation9]  }
   0x8   :  { %44 = dma.hbm_to_vmem [thread:$0]  %s37_s29, 512, %s39_s9, [#allocation7], %s2202_s13, %s2202_s13, %s2203_s14  }
   0x9   :  { %s64_s16 = sshll.u32 %s2204_s15, 4  ;;  %s88_s18 = sshll.u32 %s3567_s5, 4  ;;  %s65_s16 = int_to_ptr.vmem [resolvable:$true] %s64_s16  ;;  %s89_s18 = int_to_ptr.hbm [resolvable:$true] %s88_s18 }
   0xa   :  { %70 = dma.hbm_to_vmem [thread:$0]  %s63_s12, 512, %s65_s16, [#allocation10], %s2202_s13, %s2202_s13, %s2203_s14  }
   0xb   :  { %s23_s20 = sshll.u32 %s3562_s0, 4  ;;  %s2205_s21 = smov [#allocation12]   ;;  %s24_s20 = int_to_ptr.hbm [resolvable:$true] %s23_s20 }
   0xc   :  { %s90_s22 = sshll.u32 %s2205_s21, 4  ;;  %s2206_s23 = smov [#allocation3]   ;;  %s91_s22 = int_to_ptr.vmem [resolvable:$true] %s90_s22 }
   0xd   :  { %96 = dma.hbm_to_vmem [thread:$0]  %s89_s18, 512, %s91_s22, [#allocation13], %s2202_s13, %s2202_s13, %s2203_s14  }
   0xe   :  { %s25_s5 = sshll.u32 %s2206_s23, 4  ;;  %s2207_s24 = smov 512   ;;  %s26_s5 = int_to_ptr.vmem [resolvable:$true] %s25_s5 }
   0xf   :  { %s2208_s25 = smov 32   ;;  %s49_s0 = sshll.u32 %s3564_s2, 4  ;;  %s50_s0 = int_to_ptr.hbm [resolvable:$true] %s49_s0 }
  0x10   :  { %31 = dma.hbm_to_vmem [thread:$0]  %s24_s20, 1024, %s26_s5, [#allocation4], %s2207_s24, %s2207_s24, %s2208_s25  }
  0x11   :  { %s2209_s28 = smov [#allocation8]   ;;  %s75_s10 = sshll.u32 %s3566_s4, 4  ;;  %s76_s10 = int_to_ptr.hbm [resolvable:$true] %s75_s10 }
  0x12   :  { %s51_s29 = sshll.u32 %s2209_s28, 4  ;;  %s2210_s11 = smov [#allocation11]   ;;  %s52_s29 = int_to_ptr.vmem [resolvable:$true] %s51_s29 }
  0x13   :  { %57 = dma.hbm_to_vmem [thread:$0]  %s50_s0, 512, %s52_s29, [#allocation7], %s2202_s13, %s2202_s13, %s2203_s14  }
  0x14   :  { %s77_s12 = sshll.u32 %s2210_s11, 4  ;;  %s101_s17 = sshll.u32 %s3568_s6, 4  ;;  %s78_s12 = int_to_ptr.vmem [resolvable:$true] %s77_s12  ;;  %s102_s17 = int_to_ptr.hbm [resolvable:$true] %s101_s17 }
  0x15   :  { %83 = dma.hbm_to_vmem [thread:$0]  %s76_s10, 512, %s78_s12, [#allocation10], %s2202_s13, %s2202_s13, %s2203_s14  }
  0x16   :  { %s114_s4 = sshll.u32 %s3569_s7, 4  ;;  %s2211_s18 = smov [#allocation14]   ;;  %s115_s4 = int_to_ptr.hbm [resolvable:$true] %s114_s4 }
  0x17   :  { %s103_s3 = sshll.u32 %s2211_s18, 4  ;;  %s2212_s19 = smov [#allocation15]   ;;  %s104_s3 = int_to_ptr.vmem [resolvable:$true] %s103_s3 }
  0x18   :  { %109 = dma.hbm_to_vmem [thread:$0]  %s102_s17, 512, %s104_s3, [#allocation13], %s2202_s13, %s2202_s13, %s2203_s14  }
  0x19   :  { %s116_s6 = sshll.u32 %s2212_s19, 4  ;;  %s117_s6 = int_to_ptr.vmem [resolvable:$true] %s116_s6 }
  0x1a   :  { %122 = dma.hbm_to_vmem [thread:$0]  %s115_s4, 1024, %s117_s6, [#allocation16], %s2207_s24, %s2207_s24, %s2208_s25  }
  0x1b   :  { %2189 = dma.done.wait [#allocation4], 1024  }
  0x1c   :  { %2190 = vsyncadd [#allocation4], 4294966272 }
  0x1d   :  { %2191 = dma.done.wait [#allocation7], 1024  }
  0x1e   :  { %2192 = vsyncadd [#allocation7], 4294966272 }
  0x1f   :  { %2193 = dma.done.wait [#allocation10], 1024  }
  0x20   :  { %2194 = vsyncadd [#allocation10], 4294966272 }
  0x21   :  { %2195 = dma.done.wait [#allocation13], 1024  }
  0x22   :  { %2196 = vsyncadd [#allocation13], 4294966272 }
  0x23   :  { %2197 = dma.done.wait [#allocation16], 1024  }
  0x24   :  { %2198 = vsyncadd [#allocation16], 4294966272  ;;  %v2314_v0 = vld [vmem:[#allocation3 + $0x28] sm:$0xff]  ;;  %s2213_s7 = smov 113   ;;  %s2214_s13 = smov 112   ;;  %v2324_v2 = vld [vmem:[#allocation3 + $0x30] sm:$0xff]  ;;  %v183_v10 = vlaneseq }
  0x25   :  { %v2316_v1 = vld [vmem:[#allocation3 + $0x8] sm:$0xff]  ;;  %442 = vrot.lane.b32.xlu2 %v2314_v0, %s2213_s7  ;;  %494 = vrot.lane.b32.xlu0 %v2314_v0, %s2214_s13  ;;  %v2326_v3 = vld [vmem:[#allocation3 + $0x10] sm:$0xff]  ;;  %v2334_v4 = vld [vmem:[#allocation3 + $0x20] sm:$0xff]  ;;  %s2215_s20 = smov 127   ;;  %s2216_s21 = smov 1   ;;  %vm664_vm8 = vcmask 130048  }
  0x26   :  { %492 = vrot.lane.b32.xlu1 %v2316_v1, %s2214_s13  ;;  %v2342_v5 = vld [vmem:[#allocation3] sm:$0xff]  ;;  %s2217_s22 = smov 15   ;;  %v2374_v6 = vld [vmem:[#allocation3 + $0x38] sm:$0xff]  ;;  %s2218_s23 = smov 17   ;;  %v2418_v12 = vand.u32 127, %v183_v10  ;;  %vm869_vm9 = vcmask 7168  }
  0x27   :  { %v2382_v7 = vld [vmem:[#allocation3 + $0x18] sm:$0xff]  ;;  %s2219_s5 = smov 111  }
  0x28   :  { %v2420_v13 = vld [vmem:[#allocation15 + $0x7] ss:$8 sm:$0xf]  ;;  %vm504_vm0 = vcmp.lt.s32.totalorder %v2418_v12, 112  ;;  %vm452_vm1 = vcmp.lt.s32.totalorder %v2418_v12, 113  ;;  %vm400_vm2 = vcmp.lt.s32.totalorder %v2418_v12, 127 }
  0x29   :  { %v516_v14 = vperm.slane %v2420_v13, 0  ;;  %v2438_v22 = vld [vmem:[#allocation15 + $0x6] ss:$8 sm:$0xf]  ;;  %v517_v24 = vperm.slane %v2420_v13, 1  ;;  %vm340_vm3 = vcmp.lt.s32.totalorder %v2418_v12, 1 }
  0x2a   :  { %v464_v23 = vperm.slane %v2438_v22, 0  ;;  %v465_v33 = vperm.slane %v2438_v22, 1  ;;  %v2479_v42 = vld [vmem:[#allocation15 + $0x5] ss:$8 sm:$0xf]  ;;  %vm288_vm4 = vcmp.lt.s32.totalorder %v2418_v12, 15 }
  0x2b   :  { %v413_v43 = vperm.slane %v2479_v42, 1  ;;  %v412_v56 = vperm.slane %v2479_v42, 0  ;;  %v2520_v62 = vld [vmem:[#allocation15 + $0x3] ss:$8 sm:$0xf]  ;;  %vm236_vm5 = vcmp.lt.s32.totalorder %v2418_v12, 16 }
  0x2c   :  { %v353_v63 = vperm.slane %v2520_v62, 1  ;;  %vm185_vm6 = vcmp.lt.s32.totalorder %v2418_v12, 17  ;;  %vm556_vm7 = vcmp.lt.s32.totalorder %v2418_v12, 111 }
  0x2d   :  { %446 = vrot.lane.b32.xlu2 %v2324_v2, %s2213_s7  ;;  %498 = vrot.lane.b32.xlu0 %v2324_v2, %s2214_s13 }
  0x2e   :  { %496 = vrot.lane.b32.xlu1 %v2326_v3, %s2214_s13 }
  0x35   :  { %490 = vrot.lane.b32.xlu2 %v2334_v4, %s2214_s13  ;;  %440 = vrot.lane.b32.xlu0 %v2316_v1, %s2213_s7 }
  0x36   :  { %444 = vrot.lane.b32.xlu1 %v2326_v3, %s2213_s7 }
  0x3d   :  { %390 = vrot.lane.b32.xlu0 %v2314_v0, %s2215_s20  ;;  %488 = vrot.lane.b32.xlu2 %v2342_v5, %s2214_s13 }
  0x3e   :  { %394 = vrot.lane.b32.xlu1 %v2324_v2, %s2215_s20 }
  0x45   :  { %388 = vrot.lane.b32.xlu0 %v2316_v1, %s2215_s20  ;;  %438 = vrot.lane.b32.xlu2 %v2334_v4, %s2213_s7 }
  0x46   :  { %392 = vrot.lane.b32.xlu1 %v2326_v3, %s2215_s20 }
  0x4d   :  { %436 = vrot.lane.b32.xlu0 %v2342_v5, %s2213_s7  ;;  %326 = vrot.lane.b32.xlu2 %v2334_v4, %s2216_s21 }
  0x4e   :  { %386 = vrot.lane.b32.xlu1 %v2334_v4, %s2215_s20 }
  0x55   :  { %330 = vrot.lane.b32.xlu0 %v2314_v0, %s2216_s21  ;;  %324 = vrot.lane.b32.xlu2 %v2342_v5, %s2216_s21 }
  0x56   :  { %384 = vrot.lane.b32.xlu1 %v2342_v5, %s2215_s20 }
  0x5d   :  { %328 = vrot.lane.b32.xlu0 %v2316_v1, %s2216_s21  ;;  %278 = vrot.lane.b32.xlu2 %v2314_v0, %s2217_s22 }
  0x5e   :  { %274 = vrot.lane.b32.xlu1 %v2334_v4, %s2217_s22 }
  0x65   :  { %272 = vrot.lane.b32.xlu0 %v2342_v5, %s2217_s22  ;;  %338 = vrot.lane.b32.xlu2 %v2374_v6, %s2216_s21 }
  0x66   :  { %276 = vrot.lane.b32.xlu1 %v2316_v1, %s2217_s22 }
  0x6d   :  { %222 = vrot.lane.b32.xlu0 %v2334_v4, %s2203_s14  ;;  %336 = vrot.lane.b32.xlu2 %v2382_v7, %s2216_s21 }
  0x6e   :  { %226 = vrot.lane.b32.xlu1 %v2314_v0, %s2203_s14 }
  0x75   :  { %220 = vrot.lane.b32.xlu0 %v2342_v5, %s2203_s14  ;;  %286 = vrot.lane.b32.xlu2 %v2374_v6, %s2217_s22 }
  0x76   :  { %224 = vrot.lane.b32.xlu1 %v2316_v1, %s2203_s14 }
  0x7d   :  { %169 = vrot.lane.b32.xlu0 %v2334_v4, %s2218_s23  ;;  %284 = vrot.lane.b32.xlu2 %v2382_v7, %s2217_s22 }
  0x7e   :  { %173 = vrot.lane.b32.xlu1 %v2314_v0, %s2218_s23 }
  0x7f   :  { %v443_v8 = vpop.permute.xlu2 %442 }
  0x85   :  { %546 = vrot.lane.b32.xlu0 %v2314_v0, %s2219_s5  ;;  %167 = vrot.lane.b32.xlu2 %v2342_v5, %s2218_s23 }
  0x86   :  { %550 = vrot.lane.b32.xlu1 %v2324_v2, %s2219_s5 }
  0x87   :  { %v2408_v9 = vpop.permute.xlu2 %446 }
  0x88   :  { %v456_v34 = vsel %vm452_vm1, %v443_v8, %v2408_v9 }
  0x89   :  { %v477_v36 = vmul.f32 %v465_v33, %v456_v34 }
  0x8d   :  { %171 = vrot.lane.b32.xlu0 %v2316_v1, %s2218_s23  ;;  %544 = vrot.lane.b32.xlu2 %v2316_v1, %s2219_s5 }
  0x8e   :  { %234 = vrot.lane.b32.xlu1 %v2374_v6, %s2203_s14 }
  0x8f   :  { %v2416_v11 = vpop.permute.xlu2 %490 }
  0x95   :  { %548 = vrot.lane.b32.xlu0 %v2326_v3, %s2219_s5  ;;  %181 = vrot.lane.b32.xlu2 %v2374_v6, %s2218_s23 }
  0x96   :  { %232 = vrot.lane.b32.xlu1 %v2382_v7, %s2203_s14 }
  0x97   :  { %v495_v15 = vpop.permute.xlu0 %494  ;;  %v2430_v16 = vpop.permute.xlu2 %488 }
  0x98   :  { %v493_v17 = vpop.permute.xlu1 %492  ;;  %v510_v18 = vsel %vm504_vm0, %v2416_v11, %v495_v15 }
  0x99   :  { %v528_v19 = vmul.f32 %v516_v14, %v510_v18  ;;  %v509_v20 = vsel %vm504_vm0, %v2430_v16, %v493_v17  ;;  %v2538_v18 = vld [vmem:[#allocation15 + $0x2] ss:$8 sm:$0xf] }
  0x9a   :  { %v524_v21 = vmul.f32 %v516_v14, %v509_v20 }
  0x9b   :  { %671 = vmatpush.msra.mxu0 %v528_v19  ;;  %v352_v19 = vperm.slane %v2520_v62, 0 }
  0x9d   :  { %542 = vrot.lane.b32.xlu0 %v2334_v4, %s2219_s5  ;;  %540 = vrot.lane.b32.xlu2 %v2342_v5, %s2219_s5 }
  0x9e   :  { %179 = vrot.lane.b32.xlu1 %v2382_v7, %s2218_s23  ;;  %672 = vmatpush.msra.mxu0 %v524_v21  ;;  %v300_v21 = vperm.slane %v2538_v18, 0 }
  0x9f   :  { %v2448_v25 = vpop.permute.xlu0 %498  ;;  %v2451_v26 = vpop.permute.xlu2 %438 }
  0xa0   :  { %v2453_v27 = vpop.permute.xlu1 %496  ;;  %v458_v28 = vsel %vm452_vm1, %v2451_v26, %v443_v8  ;;  %v508_v29 = vsel %vm504_vm0, %v495_v15, %v2448_v25 }
  0xa1   :  { %v476_v30 = vmul.f32 %v464_v23, %v458_v28  ;;  %v529_v31 = vmul.f32 %v517_v24, %v508_v29  ;;  %v507_v32 = vsel %vm504_vm0, %v493_v17, %v2453_v27 }
  0xa2   :  { %v525_v35 = vmul.f32 %v517_v24, %v507_v32 }
  0xa3   :  { %673 = vmatpush.msra.mxu0 %v476_v30  ;;  %717 = vmatpush.msra.mxu2 %v529_v31 }
  0xa5   :  { %718 = vmatpush.msra.mxu2 %v525_v35  ;;  %554 = vrot.lane.b32.xlu0 %v2374_v6, %s2219_s5 }
  0xa6   :  { %552 = vrot.lane.b32.xlu1 %v2382_v7, %s2219_s5  ;;  %502 = vrot.lane.b32.xlu2 %v2374_v6, %s2214_s13 }
  0xa7   :  { %v441_v37 = vpop.permute.xlu0 %440  ;;  %719 = vmatpush.msra.mxu2 %v477_v36  ;;  %v327_v38 = vpop.permute.xlu2 %326 }
  0xa8   :  { %v2474_v39 = vpop.permute.xlu1 %444 }
  0xa9   :  { %v455_v40 = vsel %vm452_vm1, %v441_v37, %v2474_v39 }
  0xaa   :  { %v473_v41 = vmul.f32 %v465_v33, %v455_v40 }
  0xac   :  { %720 = vmatpush.msra.mxu2 %v473_v41 }
  0xad   :  { %282 = vrot.lane.b32.xlu0 %v2324_v2, %s2217_s22 }
  0xae   :  { %230 = vrot.lane.b32.xlu1 %v2324_v2, %s2203_s14  ;;  %500 = vrot.lane.b32.xlu2 %v2382_v7, %s2214_s13 }
  0xaf   :  { %v391_v44 = vpop.permute.xlu0 %390  ;;  %v325_v45 = vpop.permute.xlu2 %324 }
  0xb0   :  { %v2489_v46 = vpop.permute.xlu1 %394 }
  0xb1   :  { %v404_v47 = vsel %vm400_vm2, %v391_v44, %v2489_v46 }
  0xb2   :  { %v425_v48 = vmul.f32 %v413_v43, %v404_v47  ;;  %v2579_v47 = vld [vmem:[#allocation15 + $0x1] ss:$8 sm:$0xf] }
  0xb4   :  { %721 = vmatpush.msra.mxu2 %v425_v48  ;;  %v249_v48 = vperm.slane %v2579_v47, 1 }
  0xb6   :  { %450 = vrot.lane.b32.xlu2 %v2374_v6, %s2213_s7 }
  0xb7   :  { %v389_v49 = vpop.permute.xlu0 %388  ;;  %v2496_v50 = vpop.permute.xlu2 %278 }
  0xb8   :  { %v2498_v51 = vpop.permute.xlu1 %392 }
  0xb9   :  { %v403_v52 = vsel %vm400_vm2, %v389_v49, %v2498_v51 }
  0xba   :  { %v421_v53 = vmul.f32 %v413_v43, %v403_v52 }
  0xbc   :  { %722 = vmatpush.msra.mxu2 %v421_v53 }
  0xbe   :  { %448 = vrot.lane.b32.xlu2 %v2382_v7, %s2213_s7  ;;  %723 = vmatpush.msra.mxu2 %v2314_v0 }
  0xbf   :  { %v2506_v54 = vpop.permute.xlu0 %436  ;;  %v2508_v55 = vpop.permute.xlu2 %338 }
  0xc0   :  { %v2511_v57 = vpop.permute.xlu1 %386  ;;  %v457_v58 = vsel %vm452_vm1, %v2506_v54, %v441_v37  ;;  %724 = vmatpush.msra.mxu2 %v2316_v1  ;;  %v348_v20 = vsel %vm340_vm3, %v2508_v55, %v327_v38 }
  0xc1   :  { %v406_v59 = vsel %vm400_vm2, %v2511_v57, %v391_v44  ;;  %v472_v60 = vmul.f32 %v464_v23, %v457_v58  ;;  %v301_v23 = vperm.slane %v2538_v18, 1 }
  0xc2   :  { %v424_v61 = vmul.f32 %v412_v56, %v406_v59 }
  0xc3   :  { %674 = vmatpush.msra.mxu0 %v472_v60 }
  0xc5   :  { %675 = vmatpush.msra.mxu0 %v424_v61 }
  0xc6   :  { %398 = vrot.lane.b32.xlu2 %v2374_v6, %s2215_s20 }
  0xc7   :  { %v2526_v0 = vpop.permute.xlu0 %330  ;;  %v2528_v1 = vpop.permute.xlu2 %336 }
  0xc8   :  { %v2530_v8 = vpop.permute.xlu1 %384  ;;  %v346_v10 = vsel %vm340_vm3, %v327_v38, %v2526_v0  ;;  %v347_v24 = vsel %vm340_vm3, %v2528_v1, %v325_v45 }
  0xc9   :  { %v405_v14 = vsel %vm400_vm2, %v2530_v8, %v389_v49  ;;  %v365_v15 = vmul.f32 %v353_v63, %v346_v10  ;;  %v360_v35 = vmul.f32 %v352_v19, %v347_v24  ;;  %v2612_v24 = vld [vmem:[#allocation15 + $0x20] ss:$8 sm:$0xf] }
  0xca   :  { %v420_v17 = vmul.f32 %v412_v56, %v405_v14  ;;  %v2599_v14 = vld [vmem:[#allocation15] ss:$8 sm:$0xf] }
  0xcb   :  { %725 = vmatpush.msra.mxu2 %v365_v15  ;;  %v197_v15 = vperm.slane %v2599_v14, 1 }
  0xcc   :  { %676 = vmatpush.msra.mxu0 %v420_v17 }
  0xce   :  { %396 = vrot.lane.b32.xlu2 %v2382_v7, %s2215_s20  ;;  %677 = vmatpush.msra.mxu0 %v2334_v4  ;;  %v364_v4 = vmul.f32 %v352_v19, %v348_v20 }
  0xcf   :  { %v2553_v28 = vpop.permute.xlu0 %328  ;;  %v2555_v29 = vpop.permute.xlu2 %286 }
  0xd0   :  { %v275_v30 = vpop.permute.xlu1 %274  ;;  %v345_v31 = vsel %vm340_vm3, %v325_v45, %v2553_v28  ;;  %678 = vmatpush.msra.mxu0 %v2342_v5 }
  0xd1   :  { %v294_v32 = vsel %vm288_vm4, %v275_v30, %v2496_v50  ;;  %v296_v33 = vsel %vm288_vm4, %v2555_v29, %v275_v30  ;;  %v361_v34 = vmul.f32 %v353_v63, %v345_v31  ;;  %v569_v30 = vperm.slane %v2612_v24, 1 }
  0xd2   :  { %679 = vmatpush.msra.mxu0 %v364_v4  ;;  %v312_v36 = vmul.f32 %v300_v21, %v296_v33  ;;  %v313_v37 = vmul.f32 %v301_v23, %v294_v32 }
  0xd3   :  { %726 = vmatpush.msra.mxu2 %v361_v34 }
  0xd4   :  { %680 = vmatpush.msra.mxu0 %v360_v35  ;;  %v248_v35 = vperm.slane %v2579_v47, 0 }
  0xd5   :  { %727 = vmatpush.msra.mxu2 %v313_v37 }
  0xd6   :  { %334 = vrot.lane.b32.xlu2 %v2324_v2, %s2216_s21  ;;  %681 = vmatpush.msra.mxu0 %v312_v36 }
  0xd7   :  { %v273_v5 = vpop.permute.xlu0 %272  ;;  %v2569_v38 = vpop.permute.xlu2 %284 }
  0xd8   :  { %v2571_v40 = vpop.permute.xlu1 %276  ;;  %v295_v41 = vsel %vm288_vm4, %v2569_v38, %v273_v5 }
  0xd9   :  { %v293_v43 = vsel %vm288_vm4, %v273_v5, %v2571_v40  ;;  %v308_v44 = vmul.f32 %v300_v21, %v295_v41 }
  0xda   :  { %v309_v45 = vmul.f32 %v301_v23, %v293_v43 }
  0xdb   :  { %682 = vmatpush.msra.mxu0 %v308_v44 }
  0xdc   :  { %728 = vmatpush.msra.mxu2 %v309_v45  ;;  %v2637_v45 = vld [vmem:[#allocation6] sm:$0xff] }
  0xde   :  { %332 = vrot.lane.b32.xlu2 %v2326_v3, %s2216_s21 }
  0xdf   :  { %v223_v49 = vpop.permute.xlu0 %222  ;;  %v2585_v52 = vpop.permute.xlu2 %167 }
  0xe0   :  { %v2587_v53 = vpop.permute.xlu1 %226 }
  0xe1   :  { %v242_v56 = vsel %vm236_vm5, %v223_v49, %v2587_v53 }
  0xe2   :  { %v261_v58 = vmul.f32 %v249_v48, %v242_v56 }
  0xe4   :  { %729 = vmatpush.msra.mxu2 %v261_v58 }
  0xe6   :  { %280 = vrot.lane.b32.xlu2 %v2326_v3, %s2217_s22 }
  0xe7   :  { %v221_v59 = vpop.permute.xlu0 %220  ;;  %v545_v60 = vpop.permute.xlu2 %544 }
  0xe8   :  { %v2594_v61 = vpop.permute.xlu1 %224 }
  0xe9   :  { %v241_v63 = vsel %vm236_vm5, %v221_v59, %v2594_v61 }
  0xea   :  { %v257_v10 = vmul.f32 %v249_v48, %v241_v63 }
  0xec   :  { %730 = vmatpush.msra.mxu2 %v257_v10 }
  0xee   :  { %177 = vrot.lane.b32.xlu2 %v2324_v2, %s2218_s23 }
  0xef   :  { %v170_v17 = vpop.permute.xlu0 %169  ;;  %v2605_v19 = vpop.permute.xlu2 %181 }
  0xf0   :  { %v2607_v20 = vpop.permute.xlu1 %173 }
  0xf1   :  { %v191_v21 = vsel %vm185_vm6, %v170_v17, %v2607_v20 }
  0xf2   :  { %v209_v23 = vmul.f32 %v197_v15, %v191_v21  ;;  %v196_v21 = vperm.slane %v2599_v14, 0 }
  0xf4   :  { %731 = vmatpush.msra.mxu2 %v209_v23 }
  0xf7   :  { %v547_v31 = vpop.permute.xlu0 %546  ;;  %v2616_v4 = vpop.permute.xlu2 %540 }
  0xf8   :  { %v2618_v32 = vpop.permute.xlu1 %550 }
  0xf9   :  { %v560_v33 = vsel %vm556_vm7, %v547_v31, %v2618_v32 }
  0xfa   :  { %v581_v34 = vmul.f32 %v569_v30, %v560_v33  ;;  %v2651_v33 = vld [vmem:[#allocation6 + $0x8] sm:$0xff] }
  0xfc   :  { %754 = vmatpush.msra.mxu3 %v581_v34 }
  0xff   :  { %v2624_v36 = vpop.permute.xlu0 %171 }
 0x100   :  { %v2626_v37 = vpop.permute.xlu1 %234  ;;  %v190_v5 = vsel %vm185_vm6, %v2585_v52, %v2624_v36  ;;  %v2632_v41 = vpop.permute.xlu2 %502 }
 0x101   :  { %v244_v43 = vsel %vm236_vm5, %v2626_v37, %v223_v49  ;;  %v205_v44 = vmul.f32 %v197_v15, %v190_v5  ;;  %v193_v49 = vsel %vm185_vm6, %v2605_v19, %v170_v17  ;;  %v2653_v5 = vld [vmem:[#allocation6 + $0x10] sm:$0xff] }
 0x102   :  { %v260_v48 = vmul.f32 %v248_v35, %v244_v43  ;;  %v208_v43 = vmul.f32 %v196_v21, %v193_v49 }
 0x103   :  { %732 = vmatpush.msra.mxu2 %v205_v44  ;;  %v568_v44 = vperm.slane %v2612_v24, 0 }
 0x104   :  { %683 = vmatpush.msra.mxu0 %v260_v48  ;;  %733 = vmatmul.f32.vlgmr.msra.gmra.mxu2 %v2637_v45 }
 0x107   :  { %v549_v56 = vpop.permute.xlu0 %548 }
 0x108   :  { %v2640_v58 = vpop.permute.xlu1 %232  ;;  %v559_v63 = vsel %vm556_vm7, %v545_v60, %v549_v56  ;;  %v501_v10 = vpop.permute.xlu2 %500 }
 0x109   :  { %v243_v15 = vsel %vm236_vm5, %v2640_v58, %v221_v59  ;;  %v577_v23 = vmul.f32 %v569_v30, %v559_v63  ;;  %v561_v59 = vsel %vm556_vm7, %v2616_v4, %v545_v60  ;;  %v506_v60 = vsel %vm504_vm0, %v2448_v25, %v2632_v41 }
 0x10a   :  { %v256_v34 = vmul.f32 %v248_v35, %v243_v15  ;;  %v518_v15 = vperm.slane %v2420_v13, 2 }
 0x10b   :  { %755 = vmatpush.msra.mxu3 %v577_v23  ;;  %v2671_v23 = vld [vmem:[#allocation6 + $0x18] sm:$0xff] }
 0x10c   :  { %684 = vmatpush.msra.mxu0 %v256_v34  ;;  %1895 = vmatmul.msk.f32.vlgmr.msra.gmra.mxu3 %vm664_vm8, %v2651_v33 }
 0x10d   :  { %736 = vmatmul.f32.gmra.mxu2 %v2653_v5 }
 0x10e   :  { %685 = vmatpush.msra.mxu0 %v208_v43  ;;  %v576_v43 = vmul.f32 %v568_v44, %v561_v59 }
 0x10f   :  { %v543_v17 = vpop.permute.xlu0 %542 }
 0x110   :  { %v2662_v30 = vpop.permute.xlu1 %179  ;;  %v451_v35 = vpop.permute.xlu2 %450  ;;  %v562_v48 = vsel %vm556_vm7, %v543_v17, %v547_v31  ;;  %v505_v31 = vsel %vm504_vm0, %v2453_v27, %v501_v10  ;;  %v571_v27 = vperm.slane %v2612_v24, 3 }
 0x111   :  { %v192_v63 = vsel %vm185_vm6, %v2662_v30, %v2585_v52  ;;  %v580_v49 = vmul.f32 %v568_v44, %v562_v48  ;;  %v530_v52 = vmul.f32 %v518_v15, %v506_v60  ;;  %v466_v48 = vperm.slane %v2438_v22, 2 }
 0x112   :  { %v204_v34 = vmul.f32 %v196_v21, %v192_v63  ;;  %v454_v25 = vsel %vm452_vm1, %v2408_v9, %v451_v35  ;;  %v570_v21 = vperm.slane %v2612_v24, 2  ;;  %v526_v59 = vmul.f32 %v518_v15, %v505_v31 }
 0x113   :  { %708 = vmatpush.msra.mxu1 %v580_v49  ;;  %v519_v63 = vperm.slane %v2420_v13, 3  ;;  %v478_v15 = vmul.f32 %v466_v48, %v454_v25  ;;  %v467_v25 = vperm.slane %v2438_v22, 3 }
 0x114   :  { %686 = vmatpush.msra.mxu0 %v204_v34  ;;  %1896 = vmatmul.msk.f32.gmra.mxu3 %vm664_vm8, %v2671_v23 }
 0x115   :  { %709 = vmatpush.msra.mxu1 %v576_v43  ;;  %687 = vmatmul.f32.vlgmr.msra.gmra.mxu0 %v2637_v45 }
 0x116   :  { %1893 = vmatmul.msk.f32.vlgmr.msra.gmra.mxu1 %vm664_vm8, %v2651_v33 }
 0x117   :  { %763 = vmatpush.msrb.mxu1 %v530_v52  ;;  %v555_v44 = vpop.permute.xlu0 %554 }
 0x118   :  { %v553_v49 = vpop.permute.xlu1 %552  ;;  %v558_v60 = vsel %vm556_vm7, %v2618_v32, %v555_v44  ;;  %v564_v9 = vsel %vm556_vm7, %v555_v44, %v543_v17  ;;  %v449_v34 = vpop.permute.xlu2 %448  ;;  %v512_v32 = vsel %vm504_vm0, %v2632_v41, %v2416_v11  ;;  %v460_v11 = vsel %vm452_vm1, %v451_v35, %v2451_v26 }
 0x119   :  { %v557_v43 = vsel %vm556_vm7, %v549_v56, %v553_v49  ;;  %v563_v24 = vsel %vm556_vm7, %v553_v49, %v2616_v4  ;;  %v453_v13 = vsel %vm452_vm1, %v2474_v39, %v449_v34  ;;  %764 = vmatpush.msrb.mxu1 %v526_v59  ;;  %v582_v17 = vmul.f32 %v570_v21, %v558_v60 }
 0x11a   :  { %v583_v31 = vmul.f32 %v571_v27, %v564_v9  ;;  %v474_v52 = vmul.f32 %v466_v48, %v453_v13  ;;  %v511_v56 = vsel %vm504_vm0, %v501_v10, %v2430_v16  ;;  %v578_v4 = vmul.f32 %v570_v21, %v557_v43 }
 0x11b   :  { %765 = vmatpush.msrb.mxu1 %v478_v15  ;;  %800 = vmatpush.msrb.mxu3 %v582_v17  ;;  %v579_v44 = vmul.f32 %v571_v27, %v563_v24  ;;  %v531_v39 = vmul.f32 %v519_v63, %v512_v32  ;;  %v414_v41 = vperm.slane %v2479_v42, 2  ;;  %v527_v48 = vmul.f32 %v519_v63, %v511_v56 }
 0x11c   :  { %846 = vmatpush.msrb.mxu0 %v583_v31  ;;  %v459_v16 = vsel %vm452_vm1, %v449_v34, %v2506_v54  ;;  %v479_v10 = vmul.f32 %v467_v25, %v460_v11  ;;  %v415_v26 = vperm.slane %v2479_v42, 3  ;;  %v354_v60 = vperm.slane %v2520_v62, 2 }
 0x11d   :  { %766 = vmatpush.msrb.mxu1 %v474_v52  ;;  %690 = vmatmul.f32.gmra.mxu0 %v2653_v5  ;;  %v475_v59 = vmul.f32 %v467_v25, %v459_v16  ;;  %v302_v43 = vperm.slane %v2538_v18, 2  ;;  %v250_v31 = vperm.slane %v2579_v47, 2 }
 0x11e   :  { %801 = vmatpush.msrb.mxu3 %v578_v4  ;;  %847 = vmatpush.msrb.mxu0 %v579_v44 }
 0x11f   :  { %1894 = vmatmul.msk.f32.gmra.mxu1 %vm664_vm8, %v2671_v23  ;;  %1897 = vmatmul.msk.f32.vlgmr.msrb.gmra.mxu3 %vm664_vm8, %v2651_v33 }
 0x120   :  { %809 = vmatpush.msra.mxu3 %v531_v39  ;;  %v399_v22 = vpop.permute.xlu2 %398  ;;  %v231_v17 = vpop.permute.xlu1 %230 }
 0x121   :  { %v402_v35 = vsel %vm400_vm2, %v2489_v46, %v399_v22  ;;  %v408_v21 = vsel %vm400_vm2, %v399_v22, %v2511_v57 }
 0x122   :  { %810 = vmatpush.msra.mxu3 %v527_v48  ;;  %v426_v27 = vmul.f32 %v414_v41, %v402_v35  ;;  %v427_v54 = vmul.f32 %v415_v26, %v408_v21 }
 0x124   :  { %811 = vmatpush.msra.mxu3 %v479_v10  ;;  %767 = vmatpush.msrb.mxu1 %v426_v27 }
 0x125   :  { %1899 = vmatmul.msk.f32.vlgmr.msrb.gmra.mxu0 %vm664_vm8, %v2651_v33  ;;  %v355_v33 = vperm.slane %v2520_v62, 3  ;;  %v303_v62 = vperm.slane %v2538_v18, 3 }
 0x126   :  { %812 = vmatpush.msra.mxu3 %v475_v59 }
 0x127   :  { %1898 = vmatmul.msk.f32.gmra.mxu3 %vm664_vm8, %v2671_v23 }
 0x128   :  { %813 = vmatpush.msra.mxu3 %v427_v54  ;;  %v397_v42 = vpop.permute.xlu2 %396 }
 0x129   :  { %v401_v46 = vsel %vm400_vm2, %v2498_v51, %v397_v42  ;;  %v407_v57 = vsel %vm400_vm2, %v397_v42, %v2530_v8 }
 0x12a   :  { %v423_v63 = vmul.f32 %v415_v26, %v407_v57  ;;  %v422_v49 = vmul.f32 %v414_v41, %v401_v46 }
 0x12c   :  { %768 = vmatpush.msrb.mxu1 %v422_v49  ;;  %814 = vmatpush.msra.mxu3 %v423_v63  ;;  %v199_v63 = vperm.slane %v2599_v14, 3 }
 0x12d   :  { %1900 = vmatmul.msk.f32.gmra.mxu0 %vm664_vm8, %v2671_v23 }
 0x12e   :  { %769 = vmatpush.msrb.mxu1 %v2324_v2  ;;  %815 = vmatpush.msra.mxu3 %v2374_v6  ;;  %v283_v6 = vpop.permute.xlu0 %282 }
 0x130   :  { %v335_v51 = vpop.permute.xlu2 %334  ;;  %770 = vmatpush.msrb.mxu1 %v2326_v3  ;;  %816 = vmatpush.msra.mxu3 %v2382_v7  ;;  %v290_v7 = vsel %vm288_vm4, %v283_v6, %v2555_v29  ;;  %v251_v29 = vperm.slane %v2579_v47, 3 }
 0x131   :  { %v342_v8 = vsel %vm340_vm3, %v335_v51, %v2508_v55  ;;  %v344_v23 = vsel %vm340_vm3, %v2526_v0, %v335_v51  ;;  %v292_v55 = vsel %vm288_vm4, %v2496_v50, %v283_v6  ;;  %v315_v32 = vmul.f32 %v303_v62, %v290_v7 }
 0x132   :  { %v367_v2 = vmul.f32 %v355_v33, %v342_v8  ;;  %v366_v9 = vmul.f32 %v354_v60, %v344_v23  ;;  %v314_v18 = vmul.f32 %v302_v43, %v292_v55 }
 0x134   :  { %771 = vmatpush.msrb.mxu1 %v366_v9  ;;  %817 = vmatpush.msra.mxu3 %v367_v2 }
 0x138   :  { %v333_v34 = vpop.permute.xlu2 %332 }
 0x139   :  { %v341_v0 = vsel %vm340_vm3, %v333_v34, %v2528_v1  ;;  %v343_v24 = vsel %vm340_vm3, %v2553_v28, %v333_v34  ;;  %v238_v1 = vsel %vm236_vm5, %v231_v17, %v2626_v37  ;;  %v240_v28 = vsel %vm236_vm5, %v2587_v53, %v231_v17 }
 0x13a   :  { %v363_v13 = vmul.f32 %v355_v33, %v341_v0  ;;  %v362_v15 = vmul.f32 %v354_v60, %v343_v24  ;;  %v263_v39 = vmul.f32 %v251_v29, %v238_v1  ;;  %v262_v47 = vmul.f32 %v250_v31, %v240_v28 }
 0x13b   :  { %v198_v33 = vperm.slane %v2599_v14, 2 }
 0x13c   :  { %772 = vmatpush.msrb.mxu1 %v362_v15  ;;  %818 = vmatpush.msra.mxu3 %v363_v13 }
 0x13e   :  { %773 = vmatpush.msrb.mxu1 %v314_v18  ;;  %819 = vmatpush.msra.mxu3 %v315_v32 }
 0x140   :  { %v281_v50 = vpop.permute.xlu2 %280 }
 0x141   :  { %v289_v52 = vsel %vm288_vm4, %v281_v50, %v2569_v38  ;;  %v291_v56 = vsel %vm288_vm4, %v2571_v40, %v281_v50 }
 0x142   :  { %v311_v4 = vmul.f32 %v303_v62, %v289_v52  ;;  %v310_v44 = vmul.f32 %v302_v43, %v291_v56 }
 0x144   :  { %774 = vmatpush.msrb.mxu1 %v310_v44  ;;  %820 = vmatpush.msra.mxu3 %v311_v4 }
 0x146   :  { %775 = vmatpush.msrb.mxu1 %v262_v47  ;;  %821 = vmatpush.msra.mxu3 %v263_v39 }
 0x148   :  { %v178_v57 = vpop.permute.xlu2 %177 }
 0x149   :  { %v187_v60 = vsel %vm185_vm6, %v178_v57, %v2605_v19 }
 0x14a   :  { %v211_v9 = vmul.f32 %v199_v63, %v187_v60 }
 0x187   :  { %v734_v37 = vpop.f32.mrf.mxu2 }
 0x18f   :  { %v757_v25 = vpop.f32.mrf.mxu3 }
 0x190   :  { %v2784_v53 = vadd.f32 %v757_v25, %v734_v37  ;;  %v737_v40 = vpop.f32.mrf.mxu2 }
 0x192   :  { %v688_v11 = vpop.f32.mrf.mxu0 }
 0x193   :  { %v711_v41 = vpop.f32.mrf.mxu1 }
 0x194   :  { %v2786_v48 = vadd.f32 %v711_v41, %v688_v11 }
 0x196   :  { %v863_v38 = vadd.f32 %v2784_v53, %v2786_v48 }
 0x197   :  { %v760_v16 = vpop.f32.mrf.mxu3 }
 0x198   :  { %864 = vadd.xlane.f32.xlu0 %v863_v38  ;;  %v761_v10 = vadd.f32 %v760_v16, %v737_v40 }
 0x19a   :  { %v691_v22 = vpop.f32.mrf.mxu0 }
 0x19c   :  { %v714_v26 = vpop.f32.mrf.mxu1 }
 0x19d   :  { %v715_v35 = vadd.f32 %v714_v26, %v691_v22 }
 0x19f   :  { %v866_v21 = vadd.f32 %v761_v10, %v715_v35 }
 0x1a1   :  { %867 = vadd.xlane.f32.xlu1 %v866_v21 }
 0x1a2   :  { %v849_v32 = vpop.f32.mrf.mxu0 }
 0x1aa   :  { %v852_v4 = vpop.f32.mrf.mxu0 }
 0x1ac   :  { %228 = vrot.lane.b32.xlu0 %v2326_v3, %s2203_s14 }
 0x1ba   :  { %175 = vrot.lane.b32.xlu1 %v2326_v3, %s2218_s23  ;;  %v189_v3 = vsel %vm185_vm6, %v2607_v20, %v178_v57 }
 0x1bb   :  { %v210_v14 = vmul.f32 %v198_v33, %v189_v3 }
 0x20b   :  { %v865_v27 = vpop.xlane.xlu0 %864 }
 0x20c   :  { %v870_v54 = vsel %vm869_vm9, %v865_v27, 0.0 }
 0x214   :  { %v868_v59 = vpop.xlane.xlu1 %867 }
 0x215   :  { %v871_v42 = vsel %vm869_vm9, %v868_v59, 0.0 }
 0x216   :  { %v872_v46 = vadd.f32 %v871_v42, %v870_v54 }
 0x218   :  { %873 = vadd.xlane.f32.xlu0 %v872_v46 }
 0x21e   :  { %v229_v49 = vpop.permute.xlu0 %228 }
 0x21f   :  { %v237_v51 = vsel %vm236_vm5, %v229_v49, %v2640_v58  ;;  %v239_v8 = vsel %vm236_vm5, %v2594_v61, %v229_v49 }
 0x220   :  { %v259_v23 = vmul.f32 %v251_v29, %v237_v51  ;;  %v258_v2 = vmul.f32 %v250_v31, %v239_v8 }
 0x222   :  { %776 = vmatpush.msrb.mxu1 %v258_v2  ;;  %822 = vmatpush.msra.mxu3 %v259_v23 }
 0x224   :  { %777 = vmatpush.msrb.mxu1 %v210_v14  ;;  %823 = vmatpush.msra.mxu3 %v211_v9 }
 0x22c   :  { %v176_v19 = vpop.permute.xlu1 %175 }
 0x22d   :  { %v186_v20 = vsel %vm185_vm6, %v176_v19, %v2662_v30  ;;  %v188_v58 = vsel %vm185_vm6, %v2624_v36, %v176_v19  ;;  %v803_v36 = vpop.f32.mrf.mxu3 }
 0x22e   :  { %v207_v6 = vmul.f32 %v199_v63, %v186_v20  ;;  %v206_v62 = vmul.f32 %v198_v33, %v188_v58 }
 0x230   :  { %778 = vmatpush.msrb.mxu1 %v206_v62  ;;  %824 = vmatpush.msra.mxu3 %v207_v6 }
 0x231   :  { %825 = vmatmul.f32.vlgmr.msra.gmra.mxu3 %v2637_v45  ;;  %779 = vmatmul.f32.vlgmr.msrb.gmra.mxu1 %v2637_v45 }
 0x235   :  { %v806_v24 = vpop.f32.mrf.mxu3 }
 0x239   :  { %828 = vmatmul.f32.gmra.mxu3 %v2653_v5  ;;  %782 = vmatmul.f32.gmra.mxu1 %v2653_v5 }
 0x28b   :  { %v874_v61 = vpop.xlane.xlu0 %873 }
 0x28c   :  { %v875_v34 = vrot.slane %v874_v61, 4 }
 0x28e   :  { %v876_v43 = vadd.f32 %v875_v34, %v874_v61 }
 0x290   :  { %v877_v30 = vrot.slane %v876_v43, 2 }
 0x292   :  { %v878_v7 = vadd.f32 %v877_v30, %v876_v43 }
 0x294   :  { %v879_v55 = vrot.slane %v878_v7, 1 }
 0x296   :  { %v880_v0 = vadd.f32 %v879_v55, %v878_v7 }
 0x298   :  { %1913 = vpush %v880_v0 }
 0x2ae   :  { %v780_v13 = vpop.f32.mrf.mxu1 }
 0x2af   :  { %v804_v47 = vadd.f32 %v803_v36, %v780_v13 }
 0x2b4   :  { %v826_v15 = vpop.f32.mrf.mxu3 }
 0x2b5   :  { %v850_v37 = vadd.f32 %v849_v32, %v826_v15 }
 0x2b6   :  { %v783_v52 = vpop.f32.mrf.mxu1 }
 0x2b7   :  { %v807_v25 = vadd.f32 %v806_v24, %v783_v52 }
 0x2bc   :  { %v829_v56 = vpop.f32.mrf.mxu3 }
 0x2bd   :  { %v853_v11 = vadd.f32 %v852_v4, %v829_v56  ;;  %v2865_v56 = vld [vmem:[#allocation11 + $0x10] sm:$0xff] }
 0x2bf   :  { %v940_v41 = vadd.f32 %v853_v11, %v807_v25 }
 0x2c9   :  { %s1914_s26 = spop %1913 }
 0x2ca   :  { %s882_s27 = smul.f32 0.00024414063, %s1914_s26  ;;  %s1876_s26 = sshll.u32 %s3570_s8, 4  ;;  %s1877_s26 = int_to_ptr.hbm [resolvable:$true] %s1876_s26 }
 0x2cc   :  { %v883_v45 = vstv %s882_s27 }
 0x2cd   :  { %v2821_v18 = vsub.f32 %v2786_v48, %v883_v45  ;;  %v2824_v5 = vsub.f32 %v2784_v53, %v883_v45  ;;  %v2826_v17 = vsub.f32 %v715_v35, %v883_v45  ;;  %v2828_v29 = vsub.f32 %v761_v10, %v883_v45 }
 0x2ce   :  { %v937_v53 = vadd.f32 %v850_v37, %v804_v47 }
 0x2cf   :  { %v890_v50 = vmul.f32 %v2826_v17, %v2826_v17  ;;  %v891_v31 = vmul.f32 %v2828_v29, %v2828_v29  ;;  %v888_v1 = vmul.f32 %v2821_v18, %v2821_v18  ;;  %v889_v28 = vmul.f32 %v2824_v5, %v2824_v5 }
 0x2d1   :  { %v895_v44 = vadd.f32 %v891_v31, %v890_v50  ;;  %v892_v39 = vadd.f32 %v889_v28, %v888_v1  ;;  %v2859_v31 = vld [vmem:[#allocation9 + $0x10] sm:$0xff]  ;;  %v2862_v28 = vld [vmem:[#allocation9 + $0x18] sm:$0xff] }
 0x2d3   :  { %896 = vadd.xlane.f32.xlu1 %v895_v44  ;;  %893 = vadd.xlane.f32.xlu2 %v892_v39  ;;  %v2868_v44 = vld [vmem:[#allocation11 + $0x18] sm:$0xff] }
 0x2db   :  { %938 = vadd.xlane.f32.xlu2 %v937_v53  ;;  %941 = vadd.xlane.f32.xlu1 %v940_v41 }
 0x346   :  { %v897_v48 = vpop.xlane.xlu1 %896  ;;  %v894_v38 = vpop.xlane.xlu2 %893 }
 0x347   :  { %v899_v40 = vsel %vm869_vm9, %v897_v48, 0.0  ;;  %v898_v16 = vsel %vm869_vm9, %v894_v38, 0.0  ;;  %v2888_v48 = vld [vmem:[#allocation9] sm:$0xff] }
 0x348   :  { %v900_v22 = vadd.f32 %v899_v40, %v898_v16  ;;  %v2893_v16 = vld [vmem:[#allocation11] sm:$0xff] }
 0x34a   :  { %901 = vadd.xlane.f32.xlu0 %v900_v22 }
 0x34e   :  { %v942_v10 = vpop.xlane.xlu1 %941  ;;  %v939_v26 = vpop.xlane.xlu2 %938 }
 0x34f   :  { %v944_v35 = vsel %vm869_vm9, %v942_v10, 0.0  ;;  %v943_v21 = vsel %vm869_vm9, %v939_v26, 0.0 }
 0x350   :  { %v945_v27 = vadd.f32 %v944_v35, %v943_v21 }
 0x352   :  { %946 = vadd.xlane.f32.xlu0 %v945_v27 }
 0x3bd   :  { %v902_v59 = vpop.xlane.xlu0 %901 }
 0x3be   :  { %v903_v54 = vrot.slane %v902_v59, 4 }
 0x3c0   :  { %v904_v42 = vadd.f32 %v903_v54, %v902_v59  ;;  %v2924_v59 = vld [vmem:[#allocation15 + $0x7] ss:$8 sm:$0xf] }
 0x3c1   :  { %v1356_v54 = vperm.slane %v2924_v59, 0 }
 0x3c2   :  { %v905_v46 = vrot.slane %v904_v42, 2 }
 0x3c4   :  { %v906_v57 = vadd.f32 %v905_v46, %v904_v42 }
 0x3c5   :  { %v947_v33 = vpop.xlane.xlu0 %946 }
 0x3c6   :  { %v907_v63 = vrot.slane %v906_v57, 1  ;;  %v948_v60 = vrot.slane %v947_v33, 4 }
 0x3c8   :  { %v908_v49 = vadd.f32 %v907_v63, %v906_v57  ;;  %v949_v51 = vadd.f32 %v948_v60, %v947_v33 }
 0x3ca   :  { %1915 = vpush %v908_v49  ;;  %v950_v8 = vrot.slane %v949_v51, 2 }
 0x3cc   :  { %v951_v14 = vadd.f32 %v950_v8, %v949_v51 }
 0x3ce   :  { %v952_v58 = vrot.slane %v951_v14, 1 }
 0x3d0   :  { %v953_v61 = vadd.f32 %v952_v58, %v951_v14 }
 0x3fb   :  { %s1916_s0 = spop %1915 }
 0x3fc   :  { %s910_s28 = smul.f32 0.00024414063, %s1916_s0 }
 0x3fe   :  { %s911_s29 = sadd.f32 1e-05, %s910_s28 }
 0x400   :  { %v912_v3 = vstv %s911_s29 }
 0x401   :  { %1957 = vrsqrt.f32 %v912_v3  ;;  %vm919_vm11 = vweird.f32 %v912_v3 }
 0x407   :  { %v1958_v23 = vpop.eup %1957 }
 0x408   :  { %v914_v2 = vmul.f32 %v1958_v23, %v912_v3  ;;  %vm920_vm10 = vweird.f32 %v1958_v23 }
 0x409   :  { %vm921_vm12 = vmor %vm919_vm11, %vm920_vm10 }
 0x40a   :  { %v915_v9 = vmul.f32 %v1958_v23, %v914_v2 }
 0x40c   :  { %v916_v19 = vmul.f32 0.5, %v915_v9 }
 0x40e   :  { %v917_v20 = vsub.f32 1.5, %v916_v19 }
 0x410   :  { %v918_v6 = vmul.f32 %v1958_v23, %v917_v20  ;;  %v2969_v20 = vld [vmem:[#allocation15 + $0x6] ss:$8 sm:$0xf] }
 0x412   :  { %v922_v62 = vsel %vm921_vm12, %v1958_v23, %v918_v6 }
 0x413   :  { %1917 = vpush %v922_v62  ;;  %v1306_v62 = vperm.slane %v2969_v20, 0 }
 0x414   :  { %1919 = vpush %v953_v61 }
 0x444   :  { %s1918_s30 = spop %1917 }
 0x445   :  { %s1920_s9 = spop %1919  ;;  %v924_v45 = vstv %s1918_s30 }
 0x446   :  { %s955_s10 = smul.f32 0.00024414063, %s1920_s9  ;;  %v927_v50 = vmul.f32 %v924_v45, %v2826_v17  ;;  %v928_v1 = vmul.f32 %v924_v45, %v2828_v29  ;;  %v926_v39 = vmul.f32 %v924_v45, %v2824_v5  ;;  %v925_v5 = vmul.f32 %v924_v45, %v2821_v18 }
 0x448   :  { %v956_v34 = vstv %s955_s10  ;;  %v931_v52 = vmul.f32 %v927_v50, %v2859_v31  ;;  %v932_v4 = vmul.f32 %v928_v1, %v2862_v28  ;;  %v929_v38 = vmul.f32 %v925_v5, %v2888_v48 }
 0x449   :  { %v2842_v43 = vsub.f32 %v804_v47, %v956_v34  ;;  %v2844_v30 = vsub.f32 %v850_v37, %v956_v34  ;;  %v2846_v7 = vsub.f32 %v807_v25, %v956_v34  ;;  %v2848_v55 = vsub.f32 %v853_v11, %v956_v34  ;;  %v2872_v37 = vld [vmem:[#allocation9 + $0x8] sm:$0xff] }
 0x44a   :  { %v935_v47 = vadd.f32 %v931_v52, %v2865_v56  ;;  %v936_v17 = vadd.f32 %v932_v4, %v2868_v44  ;;  %v930_v29 = vmul.f32 %v926_v39, %v2872_v37  ;;  %v2878_v11 = vld [vmem:[#allocation11 + $0x8] sm:$0xff]  ;;  %v933_v22 = vadd.f32 %v929_v38, %v2893_v16 }
 0x44b   :  { %v963_v0 = vmul.f32 %v2846_v7, %v2846_v7  ;;  %v964_v36 = vmul.f32 %v2848_v55, %v2848_v55  ;;  %v961_v24 = vmul.f32 %v2842_v43, %v2842_v43  ;;  %v962_v13 = vmul.f32 %v2844_v30, %v2844_v30 }
 0x44c   :  { %v2876_v25 = vmax.f32 %v935_v47, 0.0  ;;  %v2880_v53 = vmax.f32 %v936_v17, 0.0  ;;  %v934_v41 = vadd.f32 %v930_v29, %v2878_v11  ;;  %v2900_v10 = vmax.f32 %v933_v22, 0.0 }
 0x44d   :  { %v968_v15 = vadd.f32 %v964_v36, %v963_v0  ;;  %v965_v32 = vadd.f32 %v962_v13, %v961_v24  ;;  %v2982_v36 = vld [vmem:[#allocation15 + $0x5] ss:$8 sm:$0xf] }
 0x44e   :  { %v2891_v40 = vmax.f32 %v934_v41, 0.0 }
 0x44f   :  { %969 = vadd.xlane.f32.xlu1 %v968_v15  ;;  %966 = vadd.xlane.f32.xlu2 %v965_v32  ;;  %v1256_v32 = vperm.slane %v2982_v36, 0 }
 0x467   :  { %1332 = vrot.lane.b32.xlu2 %v2876_v25, %s2214_s13 }
 0x468   :  { %1336 = vrot.lane.b32.xlu1 %v2880_v53, %s2214_s13 }
 0x46f   :  { %1334 = vrot.lane.b32.xlu2 %v2891_v40, %s2214_s13 }
 0x470   :  { %1286 = vrot.lane.b32.xlu1 %v2880_v53, %s2213_s7 }
 0x477   :  { %1280 = vrot.lane.b32.xlu2 %v2900_v10, %s2213_s7 }
 0x478   :  { %1232 = vrot.lane.b32.xlu1 %v2876_v25, %s2215_s20 }
 0x47f   :  { %1236 = vrot.lane.b32.xlu2 %v2880_v53, %s2215_s20 }
 0x480   :  { %1234 = vrot.lane.b32.xlu1 %v2891_v40, %s2215_s20 }
 0x487   :  { %1024 = vrot.lane.b32.xlu2 %v2876_v25, %s2218_s23 }
 0x488   :  { %1022 = vrot.lane.b32.xlu1 %v2900_v10, %s2218_s23 }
 0x48f   :  { %1128 = vrot.lane.b32.xlu2 %v2880_v53, %s2217_s22 }
 0x490   :  { %1176 = vrot.lane.b32.xlu1 %v2891_v40, %s2216_s21 }
 0x497   :  { %1126 = vrot.lane.b32.xlu2 %v2891_v40, %s2217_s22 }
 0x498   :  { %1386 = vrot.lane.b32.xlu1 %v2880_v53, %s2219_s5 }
 0x4c2   :  { %v970_v18 = vpop.xlane.xlu1 %969  ;;  %v967_v26 = vpop.xlane.xlu2 %966 }
 0x4c3   :  { %v972_v35 = vsel %vm869_vm9, %v970_v18, 0.0  ;;  %v971_v21 = vsel %vm869_vm9, %v967_v26, 0.0 }
 0x4c4   :  { %v973_v27 = vadd.f32 %v972_v35, %v971_v21 }
 0x4c6   :  { %974 = vadd.xlane.f32.xlu0 %v973_v27 }
 0x4ca   :  { %v2927_v42 = vpop.permute.xlu2 %1332 }
 0x4d2   :  { %v2961_v2 = vpop.permute.xlu2 %1334 }
 0x4da   :  { %v2929_v46 = vpop.permute.xlu1 %1336  ;;  %1330 = vrot.lane.b32.xlu0 %v2900_v10, %s2214_s13  ;;  %v2973_v6 = vpop.permute.xlu2 %1280 }
 0x4db   :  { %v1351_v57 = vsel %vm504_vm0, %v2927_v42, %v2929_v46 }
 0x4dc   :  { %v1368_v63 = vmul.f32 %v1356_v54, %v1351_v57 }
 0x4de   :  { %1508 = vmatpush.msrb.mxu2 %v1368_v63 }
 0x4e2   :  { %1282 = vrot.lane.b32.xlu0 %v2876_v25, %s2213_s7  ;;  %v2971_v58 = vpop.permute.xlu1 %1286  ;;  %v2986_v13 = vpop.permute.xlu2 %1236 }
 0x4ea   :  { %1284 = vrot.lane.b32.xlu0 %v2891_v40, %s2213_s7  ;;  %v2984_v24 = vpop.permute.xlu1 %1232 }
 0x4eb   :  { %v1251_v45 = vsel %vm400_vm2, %v2984_v24, %v2986_v13 }
 0x4ec   :  { %v1268_v52 = vmul.f32 %v1256_v32, %v1251_v45 }
 0x4f2   :  { %1230 = vrot.lane.b32.xlu0 %v2900_v10, %s2215_s20  ;;  %v2999_v4 = vpop.permute.xlu1 %1234 }
 0x4fa   :  { %1174 = vrot.lane.b32.xlu0 %v2876_v25, %s2216_s21  ;;  %v3019_v57 = vpop.permute.xlu1 %1022 }
 0x502   :  { %1172 = vrot.lane.b32.xlu0 %v2900_v10, %s2216_s21 }
 0x50a   :  { %1124 = vrot.lane.b32.xlu0 %v2876_v25, %s2217_s22 }
 0x512   :  { %1122 = vrot.lane.b32.xlu0 %v2900_v10, %s2217_s22 }
 0x51a   :  { %1074 = vrot.lane.b32.xlu0 %v2876_v25, %s2203_s14 }
 0x522   :  { %1072 = vrot.lane.b32.xlu0 %v2900_v10, %s2203_s14 }
 0x52a   :  { %1178 = vrot.lane.b32.xlu0 %v2880_v53, %s2216_s21 }
 0x532   :  { %1382 = vrot.lane.b32.xlu0 %v2876_v25, %s2219_s5 }
 0x539   :  { %v975_v49 = vpop.xlane.xlu0 %974 }
 0x53a   :  { %v976_v33 = vrot.slane %v975_v49, 4  ;;  %1380 = vrot.lane.b32.xlu0 %v2900_v10, %s2219_s5 }
 0x53c   :  { %v977_v60 = vadd.f32 %v976_v33, %v975_v49  ;;  %v3023_v49 = vpop.permute.xlu1 %1176 }
 0x53e   :  { %v978_v3 = vrot.slane %v977_v60, 2 }
 0x540   :  { %v979_v51 = vadd.f32 %v978_v3, %v977_v60  ;;  %v3027_v60 = vld [vmem:[#allocation15 + $0x20] ss:$8 sm:$0xf] }
 0x541   :  { %v1406_v3 = vperm.slane %v3027_v60, 0 }
 0x542   :  { %v980_v8 = vrot.slane %v979_v51, 1 }
 0x544   :  { %v981_v23 = vadd.f32 %v980_v8, %v979_v51  ;;  %v3030_v51 = vpop.permute.xlu1 %1386 }
 0x546   :  { %1921 = vpush %v981_v23 }
 0x54c   :  { %v2963_v9 = vpop.permute.xlu0 %1330 }
 0x54d   :  { %v1350_v14 = vsel %vm504_vm0, %v2963_v9, %v2961_v2 }
 0x54e   :  { %v1364_v19 = vmul.f32 %v1356_v54, %v1350_v14 }
 0x550   :  { %1509 = vmatpush.msrb.mxu2 %v1364_v19 }
 0x554   :  { %v2976_v61 = vpop.permute.xlu0 %1282 }
 0x555   :  { %v1301_v34 = vsel %vm452_vm1, %v2976_v61, %v2971_v58 }
 0x556   :  { %v1318_v0 = vmul.f32 %v1306_v62, %v1301_v34 }
 0x558   :  { %1510 = vmatpush.msrb.mxu2 %v1318_v0 }
 0x55c   :  { %v2988_v15 = vpop.permute.xlu0 %1284 }
 0x55d   :  { %v1300_v50 = vsel %vm452_vm1, %v2973_v6, %v2988_v15 }
 0x55e   :  { %v1314_v1 = vmul.f32 %v1306_v62, %v1300_v50 }
 0x560   :  { %1511 = vmatpush.msrb.mxu2 %v1314_v1 }
 0x562   :  { %1512 = vmatpush.msrb.mxu2 %v1268_v52 }
 0x564   :  { %v3001_v39 = vpop.permute.xlu0 %1230 }
 0x565   :  { %v1250_v47 = vsel %vm400_vm2, %v3001_v39, %v2999_v4 }
 0x566   :  { %v1264_v17 = vmul.f32 %v1256_v32, %v1250_v47 }
 0x568   :  { %1513 = vmatpush.msrb.mxu2 %v1264_v17 }
 0x56a   :  { %1514 = vmatpush.msrb.mxu2 %v2876_v25 }
 0x56c   :  { %v3008_v29 = vpop.permute.xlu0 %1174  ;;  %1515 = vmatpush.msrb.mxu2 %v2900_v10 }
 0x574   :  { %v3011_v5 = vpop.permute.xlu0 %1172 }
 0x577   :  { %s1922_s11 = spop %1921 }
 0x578   :  { %s983_s12 = smul.f32 0.00024414063, %s1922_s11 }
 0x57a   :  { %s984_s15 = sadd.f32 1e-05, %s983_s12 }
 0x57c   :  { %v985_v41 = vstv %s984_s15  ;;  %v3013_v38 = vpop.permute.xlu0 %1124 }
 0x57d   :  { %1959 = vrsqrt.f32 %v985_v41  ;;  %vm992_vm14 = vweird.f32 %v985_v41 }
 0x583   :  { %v1960_v22 = vpop.eup %1959 }
 0x584   :  { %v987_v18 = vmul.f32 %v1960_v22, %v985_v41  ;;  %v3015_v26 = vpop.permute.xlu0 %1122  ;;  %vm993_vm13 = vweird.f32 %v1960_v22 }
 0x585   :  { %vm994_vm15 = vmor %vm992_vm14, %vm993_vm13 }
 0x586   :  { %v988_v35 = vmul.f32 %v1960_v22, %v987_v18 }
 0x588   :  { %v989_v21 = vmul.f32 0.5, %v988_v35 }
 0x58a   :  { %v990_v25 = vsub.f32 1.5, %v989_v21  ;;  %v1307_v21 = vperm.slane %v2969_v20, 1 }
 0x58c   :  { %v3017_v27 = vpop.permute.xlu0 %1074  ;;  %v991_v10 = vmul.f32 %v1960_v22, %v990_v25 }
 0x58e   :  { %v995_v54 = vsel %vm994_vm15, %v1960_v22, %v991_v10 }
 0x58f   :  { %1923 = vpush %v995_v54 }
 0x594   :  { %v3021_v63 = vpop.permute.xlu0 %1072 }
 0x59c   :  { %v3025_v33 = vpop.permute.xlu0 %1178 }
 0x5a4   :  { %v3032_v8 = vpop.permute.xlu0 %1382 }
 0x5a5   :  { %v1401_v23 = vsel %vm556_vm7, %v3032_v8, %v3030_v51 }
 0x5a6   :  { %v3040_v14 = vmul.f32 %v1406_v3, %v1401_v23  ;;  %v3151_v23 = vld [vmem:[#allocation15 + $0x3] ss:$8 sm:$0xf] }
 0x5a8   :  { %1545 = vmatpush.msra.mxu1 %v3040_v14 }
 0x5c0   :  { %s1924_s16 = spop %1923 }
 0x5c1   :  { %v997_v19 = vstv %s1924_s16 }
 0x5c2   :  { %v1000_v62 = vmul.f32 %v997_v19, %v2846_v7  ;;  %v1001_v34 = vmul.f32 %v997_v19, %v2848_v55  ;;  %v999_v0 = vmul.f32 %v997_v19, %v2844_v30  ;;  %v998_v50 = vmul.f32 %v997_v19, %v2842_v43 }
 0x5c4   :  { %v1004_v32 = vmul.f32 %v1000_v62, %v2859_v31  ;;  %v1005_v45 = vmul.f32 %v1001_v34, %v2862_v28  ;;  %v1003_v47 = vmul.f32 %v999_v0, %v2872_v37  ;;  %v1002_v7 = vmul.f32 %v998_v50, %v2888_v48  ;;  %v3105_v28 = vpop.permute.xlu2 %1024 }
 0x5c5   :  { %v1357_v37 = vperm.slane %v2924_v59, 1  ;;  %v1257_v50 = vperm.slane %v2982_v36, 1 }
 0x5c6   :  { %v1008_v1 = vadd.f32 %v1004_v32, %v2865_v56  ;;  %v1009_v52 = vadd.f32 %v1005_v45, %v2868_v44  ;;  %v1007_v43 = vadd.f32 %v1003_v47, %v2878_v11  ;;  %v1006_v30 = vadd.f32 %v1002_v7, %v2893_v16 }
 0x5c8   :  { %v3052_v17 = vmax.f32 %v1008_v1, 0.0  ;;  %v3054_v41 = vmax.f32 %v1009_v52, 0.0  ;;  %v3065_v55 = vmax.f32 %v1007_v43, 0.0  ;;  %v3067_v31 = vmax.f32 %v1006_v30, 0.0 }
 0x5ca   :  { %1036 = vrot.lane.b32.xlu0 %v3054_v41, %s2218_s23  ;;  %1186 = vrot.lane.b32.xlu1 %v3054_v41, %s2216_s21 }
 0x5cb   :  { %1340 = vrot.lane.b32.xlu2 %v3052_v17, %s2214_s13 }
 0x5cc   :  { %v3113_v56 = vpop.permute.xlu2 %1128 }
 0x5d2   :  { %1076 = vrot.lane.b32.xlu0 %v2891_v40, %s2203_s14  ;;  %1184 = vrot.lane.b32.xlu1 %v3065_v55, %s2216_s21 }
 0x5d3   :  { %1338 = vrot.lane.b32.xlu2 %v3067_v31, %s2214_s13 }
 0x5d4   :  { %v3121_v44 = vpop.permute.xlu2 %1126 }
 0x5da   :  { %1026 = vrot.lane.b32.xlu0 %v2891_v40, %s2218_s23  ;;  %1136 = vrot.lane.b32.xlu1 %v3054_v41, %s2217_s22 }
 0x5db   :  { %1290 = vrot.lane.b32.xlu2 %v3052_v17, %s2213_s7 }
 0x5e2   :  { %1182 = vrot.lane.b32.xlu0 %v3052_v17, %s2216_s21  ;;  %1134 = vrot.lane.b32.xlu1 %v3065_v55, %s2217_s22 }
 0x5e3   :  { %1288 = vrot.lane.b32.xlu2 %v3067_v31, %s2213_s7 }
 0x5ea   :  { %1082 = vrot.lane.b32.xlu0 %v3052_v17, %s2203_s14  ;;  %1086 = vrot.lane.b32.xlu1 %v3054_v41, %s2203_s14 }
 0x5eb   :  { %1240 = vrot.lane.b32.xlu2 %v3052_v17, %s2215_s20 }
 0x5f2   :  { %1084 = vrot.lane.b32.xlu1 %v3065_v55, %s2203_s14 }
 0x5f3   :  { %1238 = vrot.lane.b32.xlu2 %v3067_v31, %s2215_s20 }
 0x5fa   :  { %1384 = vrot.lane.b32.xlu1 %v2891_v40, %s2219_s5 }
 0x5fb   :  { %1034 = vrot.lane.b32.xlu2 %v3065_v55, %s2218_s23 }
 0x602   :  { %1028 = vrot.lane.b32.xlu1 %v2880_v53, %s2218_s23 }
 0x603   :  { %1078 = vrot.lane.b32.xlu2 %v2880_v53, %s2203_s14 }
 0x60a   :  { %1388 = vrot.lane.b32.xlu1 %v3067_v31, %s2219_s5 }
 0x60b   :  { %1390 = vrot.lane.b32.xlu2 %v3052_v17, %s2219_s5 }
 0x612   :  { %1344 = vrot.lane.b32.xlu1 %v3054_v41, %s2214_s13 }
 0x613   :  { %1242 = vrot.lane.b32.xlu2 %v3065_v55, %s2215_s20 }
 0x61a   :  { %1342 = vrot.lane.b32.xlu1 %v3065_v55, %s2214_s13 }
 0x61b   :  { %1080 = vrot.lane.b32.xlu2 %v3067_v31, %s2203_s14 }
 0x622   :  { %1294 = vrot.lane.b32.xlu1 %v3054_v41, %s2213_s7 }
 0x625   :  { %v3126_v11 = vpop.permute.xlu2 %1340 }
 0x626   :  { %v1349_v48 = vsel %vm504_vm0, %v2929_v46, %v3126_v11  ;;  %v3143_v46 = vpop.permute.xlu0 %1380 }
 0x627   :  { %v1369_v16 = vmul.f32 %v1357_v37, %v1349_v48 }
 0x629   :  { %1554 = vmatpush.msra.mxu0 %v1369_v16 }
 0x62a   :  { %1292 = vrot.lane.b32.xlu1 %v3065_v55, %s2213_s7 }
 0x62d   :  { %v3134_v22 = vpop.permute.xlu2 %1338 }
 0x62e   :  { %v1348_v18 = vsel %vm504_vm0, %v2961_v2, %v3134_v22  ;;  %v1198_v2 = vperm.slane %v3151_v23, 0 }
 0x62f   :  { %v1365_v35 = vmul.f32 %v1357_v37, %v1348_v18  ;;  %v3187_v37 = vld [vmem:[#allocation15 + $0x2] ss:$8 sm:$0xf] }
 0x630   :  { %v1148_v48 = vperm.slane %v3187_v37, 0 }
 0x631   :  { %1555 = vmatpush.msra.mxu0 %v1365_v35 }
 0x632   :  { %1244 = vrot.lane.b32.xlu1 %v3054_v41, %s2215_s20 }
 0x635   :  { %v3145_v25 = vpop.permute.xlu2 %1290 }
 0x636   :  { %v1299_v10 = vsel %vm452_vm1, %v2971_v58, %v3145_v25 }
 0x637   :  { %v1319_v54 = vmul.f32 %v1307_v21, %v1299_v10 }
 0x639   :  { %1556 = vmatpush.msra.mxu0 %v1319_v54 }
 0x63a   :  { %1180 = vrot.lane.b32.xlu1 %v3067_v31, %s2216_s21  ;;  %s2220_s21 = smov [#allocation17]  }
 0x63c   :  { %v3156_v19 = vpop.permute.xlu1 %1186  ;;  %v3158_v62 = vpop.permute.xlu0 %1036 }
 0x63d   :  { %v1195_v34 = vsel %vm340_vm3, %v3156_v19, %v3008_v29  ;;  %v3164_v0 = vpop.permute.xlu2 %1288 }
 0x63e   :  { %v1298_v58 = vsel %vm452_vm1, %v2988_v15, %v3164_v0  ;;  %v1210_v32 = vmul.f32 %v1198_v2, %v1195_v34  ;;  %v1199_v34 = vperm.slane %v3151_v23, 1 }
 0x63f   :  { %v1315_v45 = vmul.f32 %v1307_v21, %v1298_v58 }
 0x640   :  { %1516 = vmatpush.msrb.mxu2 %v1210_v32 }
 0x641   :  { %1557 = vmatpush.msra.mxu0 %v1315_v45  ;;  %v1149_v45 = vperm.slane %v3187_v37, 1 }
 0x642   :  { %1132 = vrot.lane.b32.xlu1 %v3052_v17, %s2217_s22 }
 0x644   :  { %v3173_v1 = vpop.permute.xlu1 %1184  ;;  %v3175_v52 = vpop.permute.xlu0 %1076 }
 0x645   :  { %v1194_v47 = vsel %vm340_vm3, %v3173_v1, %v3011_v5  ;;  %v3181_v7 = vpop.permute.xlu2 %1240 }
 0x646   :  { %v1249_v15 = vsel %vm400_vm2, %v2986_v13, %v3181_v7  ;;  %v1206_v43 = vmul.f32 %v1198_v2, %v1194_v47  ;;  %v1193_v2 = vsel %vm340_vm3, %v3008_v29, %v3025_v33 }
 0x647   :  { %v1269_v30 = vmul.f32 %v1257_v50, %v1249_v15 }
 0x648   :  { %1517 = vmatpush.msrb.mxu2 %v1206_v43  ;;  %v1142_v43 = vsel %vm288_vm4, %v3015_v26, %v3121_v44 }
 0x649   :  { %1558 = vmatpush.msra.mxu0 %v1269_v30 }
 0x64a   :  { %1130 = vrot.lane.b32.xlu1 %v3067_v31, %s2217_s22  ;;  %s1874_s22 = sshll.u32 %s2220_s21, 4  ;;  %s1875_s22 = int_to_ptr.vmem [resolvable:$true] %s1874_s22 }
 0x64c   :  { %v3192_v16 = vpop.permute.xlu1 %1136  ;;  %v3194_v18 = vpop.permute.xlu0 %1026 }
 0x64d   :  { %v1145_v13 = vsel %vm288_vm4, %v3192_v16, %v3013_v38  ;;  %v3200_v35 = vpop.permute.xlu2 %1238 }
 0x64e   :  { %v1248_v21 = vsel %vm400_vm2, %v2999_v4, %v3200_v35  ;;  %v1160_v10 = vmul.f32 %v1148_v48, %v1145_v13  ;;  %v1192_v4 = vsel %vm340_vm3, %v3011_v5, %v3023_v49  ;;  %v1143_v5 = vsel %vm288_vm4, %v3013_v38, %v3113_v56  ;;  %v3238_v13 = vld [vmem:[#allocation15 + $0x1] ss:$8 sm:$0xf] }
 0x64f   :  { %v1265_v54 = vmul.f32 %v1257_v50, %v1248_v21  ;;  %v1211_v50 = vmul.f32 %v1199_v34, %v1193_v2  ;;  %v1207_v15 = vmul.f32 %v1199_v34, %v1192_v4  ;;  %v1161_v30 = vmul.f32 %v1149_v45, %v1143_v5 }
 0x650   :  { %1518 = vmatpush.msrb.mxu2 %v1160_v10  ;;  %v1098_v38 = vperm.slane %v3238_v13, 0  ;;  %v1100_v21 = vperm.slane %v3238_v13, 2  ;;  %v1092_v2 = vsel %vm236_vm5, %v3021_v63, %v3175_v52 }
 0x651   :  { %1559 = vmatpush.msra.mxu0 %v1265_v54 }
 0x652   :  { %1032 = vrot.lane.b32.xlu1 %v3052_v17, %s2218_s23 }
 0x653   :  { %1560 = vmatpush.msra.mxu0 %v2880_v53 }
 0x654   :  { %v3218_v58 = vpop.permute.xlu1 %1134  ;;  %v3220_v32 = vpop.permute.xlu0 %1182 }
 0x655   :  { %v1144_v29 = vsel %vm288_vm4, %v3218_v58, %v3015_v26  ;;  %1561 = vmatpush.msra.mxu0 %v2891_v40  ;;  %v3228_v53 = vpop.permute.xlu2 %1034  ;;  %v1101_v40 = vperm.slane %v3238_v13, 3  ;;  %v1099_v26 = vperm.slane %v3238_v13, 1  ;;  %v3264_v13 = vld [vmem:[#allocation15] ss:$8 sm:$0xf] }
 0x656   :  { %v1156_v47 = vmul.f32 %v1148_v48, %v1144_v29  ;;  %v1157_v48 = vmul.f32 %v1149_v45, %v1142_v43 }
 0x657   :  { %1562 = vmatpush.msra.mxu0 %v1211_v50 }
 0x658   :  { %1519 = vmatpush.msrb.mxu2 %v1156_v47 }
 0x659   :  { %1563 = vmatpush.msra.mxu0 %v1207_v15 }
 0x65a   :  { %1392 = vrot.lane.b32.xlu1 %v3065_v55, %s2219_s5 }
 0x65b   :  { %1564 = vmatpush.msra.mxu0 %v1161_v30  ;;  %v1107_v30 = vmul.f32 %v1099_v26, %v1092_v2 }
 0x65c   :  { %v1087_v10 = vpop.permute.xlu1 %1086  ;;  %v1083_v54 = vpop.permute.xlu0 %1082 }
 0x65d   :  { %v1095_v34 = vsel %vm236_vm5, %v1087_v10, %v3017_v27  ;;  %v1089_v4 = vsel %vm236_vm5, %v1083_v54, %v1087_v10  ;;  %1565 = vmatpush.msra.mxu0 %v1157_v48  ;;  %v1079_v45 = vpop.permute.xlu2 %1078  ;;  %v1048_v10 = vperm.slane %v3264_v13, 0 }
 0x65e   :  { %v3255_v50 = vmul.f32 %v1101_v40, %v1089_v4  ;;  %v1091_v29 = vsel %vm236_vm5, %v1079_v45, %v1083_v54  ;;  %v1093_v5 = vsel %vm236_vm5, %v3017_v27, %v1079_v45  ;;  %v1110_v47 = vmul.f32 %v1098_v38, %v1095_v34 }
 0x65f   :  { %v1111_v15 = vmul.f32 %v1099_v26, %v1093_v5  ;;  %v3262_v43 = vmul.f32 %v1100_v21, %v1091_v29  ;;  %v1045_v54 = vsel %vm185_vm6, %v3158_v62, %v3105_v28  ;;  %v1044_v26 = vsel %vm185_vm6, %v3228_v53, %v3019_v57  ;;  %v3281_v5 = vld [vmem:[#allocation8] sm:$0xff] }
 0x660   :  { %1520 = vmatpush.msrb.mxu2 %v1110_v47  ;;  %v1060_v2 = vmul.f32 %v1048_v10, %v1045_v54  ;;  %v1056_v45 = vmul.f32 %v1048_v10, %v1044_v26  ;;  %v1407_v29 = vperm.slane %v3027_v60, 1  ;;  %v3296_v54 = vld [vmem:[#allocation8 + $0x8] sm:$0xff] }
 0x661   :  { %1566 = vmatpush.msra.mxu0 %v1111_v15 }
 0x663   :  { %1567 = vmatpush.msra.mxu0 %v1107_v30 }
 0x664   :  { %v1085_v48 = vpop.permute.xlu1 %1084 }
 0x665   :  { %v1094_v27 = vsel %vm236_vm5, %v1085_v48, %v3021_v63  ;;  %v3274_v34 = vpop.permute.xlu2 %1390 }
 0x666   :  { %v1106_v4 = vmul.f32 %v1098_v38, %v1094_v27  ;;  %v1399_v63 = vsel %vm556_vm7, %v3030_v51, %v3274_v34  ;;  %v3300_v51 = vld [vmem:[#allocation8 + $0x10] sm:$0xff]  ;;  %v1049_v27 = vperm.slane %v3264_v13, 1 }
 0x667   :  { %v1419_v10 = vmul.f32 %v1407_v29, %v1399_v63 }
 0x668   :  { %1521 = vmatpush.msrb.mxu2 %v1106_v4 }
 0x66a   :  { %1522 = vmatpush.msrb.mxu2 %v1060_v2 }
 0x66c   :  { %v1385_v47 = vpop.permute.xlu1 %1384  ;;  %1523 = vmatpush.msrb.mxu2 %v1056_v45 }
 0x66d   :  { %v1400_v38 = vsel %vm556_vm7, %v3143_v46, %v1385_v47  ;;  %v3290_v15 = vpop.permute.xlu2 %1242  ;;  %1524 = vmatmul.f32.vlgmr.msrb.gmra.mxu2 %v3281_v5 }
 0x66e   :  { %1909 = vmatpush.msra.mxu2 %v3040_v14  ;;  %v1414_v30 = vmul.f32 %v1406_v3, %v1400_v38  ;;  %v1042_v3 = vsel %vm185_vm6, %v3019_v57, %v3194_v18 }
 0x66f   :  { %v1057_v57 = vmul.f32 %v1049_v27, %v1042_v3 }
 0x670   :  { %1546 = vmatpush.msra.mxu1 %v1414_v30  ;;  %1910 = vmatpush.msra.mxu2 %v1414_v30 }
 0x671   :  { %1901 = vmatmul.msk.f32.vlgmr.msra.gmra.mxu1 %vm664_vm8, %v3296_v54 }
 0x672   :  { %1591 = vmatpush.msrb.mxu1 %v1419_v10  ;;  %v3323_v10 = vld [vmem:[#allocation8 + $0x18] sm:$0xff] }
 0x674   :  { %v3303_v4 = vpop.permute.xlu1 %1028 }
 0x675   :  { %v1043_v14 = vsel %vm185_vm6, %v3105_v28, %v3303_v4  ;;  %v1081_v26 = vpop.permute.xlu2 %1080  ;;  %1527 = vmatmul.f32.gmra.mxu2 %v3300_v51 }
 0x676   :  { %v1061_v2 = vmul.f32 %v1049_v27, %v1043_v14  ;;  %v1088_v45 = vsel %vm236_vm5, %v1081_v26, %v1085_v48  ;;  %v1090_v63 = vsel %vm236_vm5, %v3175_v52, %v1081_v26 }
 0x677   :  { %v3319_v38 = vmul.f32 %v1100_v21, %v1090_v63  ;;  %v3321_v30 = vmul.f32 %v1101_v40, %v1088_v45  ;;  %v1358_v40 = vperm.slane %v2924_v59, 2  ;;  %v1359_v21 = vperm.slane %v2924_v59, 3 }
 0x678   :  { %1568 = vmatpush.msra.mxu0 %v1061_v2  ;;  %v1309_v63 = vperm.slane %v2969_v20, 3 }
 0x67a   :  { %1569 = vmatpush.msra.mxu0 %v1057_v57 }
 0x67b   :  { %1570 = vmatmul.f32.vlgmr.msra.gmra.mxu0 %v3281_v5 }
 0x67c   :  { %v3326_v28 = vpop.permute.xlu1 %1388 }
 0x67d   :  { %v1398_v48 = vsel %vm556_vm7, %v1385_v47, %v3326_v28  ;;  %1902 = vmatmul.msk.f32.vlgmr.msra.gmra.mxu2 %vm664_vm8, %v3323_v10 }
 0x67e   :  { %v1415_v52 = vmul.f32 %v1407_v29, %v1398_v48 }
 0x680   :  { %1592 = vmatpush.msrb.mxu1 %v1415_v52 }
 0x681   :  { %1903 = vmatmul.msk.f32.vlgmr.msrb.gmra.mxu1 %vm664_vm8, %v3296_v54 }
 0x683   :  { %1573 = vmatmul.f32.gmra.mxu0 %v3300_v51 }
 0x684   :  { %v1345_v27 = vpop.permute.xlu1 %1344 }
 0x685   :  { %v1347_v3 = vsel %vm504_vm0, %v3126_v11, %v1345_v27  ;;  %v1353_v29 = vsel %vm504_vm0, %v1345_v27, %v2927_v42  ;;  %v1308_v42 = vperm.slane %v2969_v20, 2 }
 0x686   :  { %v1370_v47 = vmul.f32 %v1358_v40, %v1347_v3  ;;  %v1371_v14 = vmul.f32 %v1359_v21, %v1353_v29 }
 0x688   :  { %1600 = vmatpush.msrb.mxu3 %v1370_v47  ;;  %1646 = vmatpush.msra.mxu1 %v1371_v14  ;;  %v1246_v47 = vsel %vm400_vm2, %v3200_v35, %v3290_v15  ;;  %v1200_v35 = vperm.slane %v3151_v23, 2 }
 0x689   :  { %1904 = vmatmul.msk.f32.gmra.mxu1 %vm664_vm8, %v3323_v10 }
 0x68c   :  { %v1343_v26 = vpop.permute.xlu1 %1342 }
 0x68d   :  { %v1346_v59 = vsel %vm504_vm0, %v3134_v22, %v1343_v26  ;;  %v1352_v11 = vsel %vm504_vm0, %v1343_v26, %v2963_v9 }
 0x68e   :  { %v1366_v2 = vmul.f32 %v1358_v40, %v1346_v59  ;;  %v1367_v45 = vmul.f32 %v1359_v21, %v1352_v11 }
 0x690   :  { %1601 = vmatpush.msrb.mxu3 %v1366_v2  ;;  %1647 = vmatpush.msra.mxu1 %v1367_v45  ;;  %v1201_v2 = vperm.slane %v3151_v23, 3 }
 0x694   :  { %v1295_v57 = vpop.permute.xlu1 %1294 }
 0x695   :  { %v1297_v48 = vsel %vm452_vm1, %v3145_v25, %v1295_v57  ;;  %v1303_v22 = vsel %vm452_vm1, %v1295_v57, %v2976_v61  ;;  %v1258_v25 = vperm.slane %v2982_v36, 2  ;;  %v1259_v61 = vperm.slane %v2982_v36, 3 }
 0x696   :  { %v1320_v52 = vmul.f32 %v1308_v42, %v1297_v48  ;;  %v1321_v27 = vmul.f32 %v1309_v63, %v1303_v22 }
 0x697   :  { %v1266_v59 = vmul.f32 %v1258_v25, %v1246_v47 }
 0x698   :  { %1602 = vmatpush.msrb.mxu3 %v1320_v52  ;;  %1648 = vmatpush.msra.mxu1 %v1321_v27 }
 0x69c   :  { %v1293_v9 = vpop.permute.xlu1 %1292 }
 0x69d   :  { %v1296_v40 = vsel %vm452_vm1, %v3164_v0, %v1293_v9  ;;  %v1302_v20 = vsel %vm452_vm1, %v1293_v9, %v2973_v6  ;;  %v1252_v0 = vsel %vm400_vm2, %v3290_v15, %v3001_v39  ;;  %v1189_v39 = vsel %vm340_vm3, %v3220_v32, %v3156_v19 }
 0x69e   :  { %v1316_v21 = vmul.f32 %v1308_v42, %v1296_v40  ;;  %v1317_v3 = vmul.f32 %v1309_v63, %v1302_v20  ;;  %v1267_v11 = vmul.f32 %v1259_v61, %v1252_v0  ;;  %v1213_v19 = vmul.f32 %v1201_v2, %v1189_v39 }
 0x6a0   :  { %1603 = vmatpush.msrb.mxu3 %v1316_v21  ;;  %1649 = vmatpush.msra.mxu1 %v1317_v3 }
 0x6a4   :  { %v1245_v29 = vpop.permute.xlu1 %1244 }
 0x6a5   :  { %v1247_v6 = vsel %vm400_vm2, %v3181_v7, %v1245_v29  ;;  %v1253_v14 = vsel %vm400_vm2, %v1245_v29, %v2984_v24  ;;  %v1191_v24 = vsel %vm340_vm3, %v3025_v33, %v3220_v32 }
 0x6a6   :  { %v1270_v36 = vmul.f32 %v1258_v25, %v1247_v6  ;;  %v1271_v26 = vmul.f32 %v1259_v61, %v1253_v14  ;;  %v1212_v45 = vmul.f32 %v1200_v35, %v1191_v24 }
 0x6a8   :  { %1604 = vmatpush.msrb.mxu3 %v1270_v36  ;;  %1650 = vmatpush.msra.mxu1 %v1271_v26  ;;  %v1408_v36 = vperm.slane %v3027_v60, 2  ;;  %v1409_v26 = vperm.slane %v3027_v60, 3 }
 0x6aa   :  { %1605 = vmatpush.msrb.mxu3 %v1266_v59  ;;  %1651 = vmatpush.msra.mxu1 %v1267_v11 }
 0x6ac   :  { %v1181_v7 = vpop.permute.xlu1 %1180  ;;  %1606 = vmatpush.msrb.mxu3 %v3052_v17  ;;  %1652 = vmatpush.msra.mxu1 %v3054_v41  ;;  %v1150_v17 = vperm.slane %v3187_v37, 2 }
 0x6ad   :  { %v1188_v23 = vsel %vm340_vm3, %v1181_v7, %v3173_v1  ;;  %v1190_v15 = vsel %vm340_vm3, %v3023_v49, %v1181_v7  ;;  %v1151_v1 = vperm.slane %v3187_v37, 3 }
 0x6ae   :  { %1607 = vmatpush.msrb.mxu3 %v3067_v31  ;;  %1653 = vmatpush.msra.mxu1 %v3065_v55  ;;  %v1208_v33 = vmul.f32 %v1200_v35, %v1190_v15  ;;  %v1209_v32 = vmul.f32 %v1201_v2, %v1188_v23 }
 0x6b0   :  { %1608 = vmatpush.msrb.mxu3 %v1212_v45  ;;  %1654 = vmatpush.msra.mxu1 %v1213_v19 }
 0x6b2   :  { %1609 = vmatpush.msrb.mxu3 %v1208_v33  ;;  %1655 = vmatpush.msra.mxu1 %v1209_v32 }
 0x6b4   :  { %v1133_v42 = vpop.permute.xlu1 %1132 }
 0x6b5   :  { %v1139_v49 = vsel %vm288_vm4, %v1133_v42, %v3192_v16  ;;  %v1141_v63 = vsel %vm288_vm4, %v3113_v56, %v1133_v42  ;;  %v1050_v56 = vperm.slane %v3264_v13, 2  ;;  %v1051_v16 = vperm.slane %v3264_v13, 3 }
 0x6b6   :  { %v1162_v55 = vmul.f32 %v1150_v17, %v1141_v63  ;;  %v1163_v57 = vmul.f32 %v1151_v1, %v1139_v49 }
 0x6b8   :  { %1610 = vmatpush.msrb.mxu3 %v1162_v55  ;;  %1656 = vmatpush.msra.mxu1 %v1163_v57 }
 0x6bc   :  { %v1131_v48 = vpop.permute.xlu1 %1130 }
 0x6bd   :  { %v1138_v22 = vsel %vm288_vm4, %v1131_v48, %v3218_v58  ;;  %v1140_v37 = vsel %vm288_vm4, %v3121_v44, %v1131_v48 }
 0x6be   :  { %v1158_v52 = vmul.f32 %v1150_v17, %v1140_v37  ;;  %v1159_v27 = vmul.f32 %v1151_v1, %v1138_v22 }
 0x6c0   :  { %1611 = vmatpush.msrb.mxu3 %v1158_v52  ;;  %1657 = vmatpush.msra.mxu1 %v1159_v27 }
 0x6c2   :  { %1612 = vmatpush.msrb.mxu3 %v3262_v43  ;;  %1658 = vmatpush.msra.mxu1 %v3255_v50 }
 0x6c4   :  { %v1033_v9 = vpop.permute.xlu1 %1032  ;;  %1613 = vmatpush.msrb.mxu3 %v3319_v38  ;;  %1659 = vmatpush.msra.mxu1 %v3321_v30 }
 0x6c5   :  { %v1039_v44 = vsel %vm185_vm6, %v1033_v9, %v3158_v62  ;;  %v1041_v58 = vsel %vm185_vm6, %v3303_v4, %v1033_v9 }
 0x6c6   :  { %v1062_v43 = vmul.f32 %v1050_v56, %v1041_v58  ;;  %v1063_v40 = vmul.f32 %v1051_v16, %v1039_v44 }
 0x6c8   :  { %1614 = vmatpush.msrb.mxu3 %v1062_v43  ;;  %1660 = vmatpush.msra.mxu1 %v1063_v40 }
 0x6cc   :  { %v1393_v14 = vpop.permute.xlu1 %1392 }
 0x6cd   :  { %v1396_v59 = vsel %vm556_vm7, %v3326_v28, %v1393_v14  ;;  %v1402_v60 = vsel %vm556_vm7, %v1393_v14, %v3143_v46 }
 0x6ce   :  { %v1416_v23 = vmul.f32 %v1408_v36, %v1396_v59  ;;  %v1417_v15 = vmul.f32 %v1409_v26, %v1402_v60 }
 0x6ee   :  { %v1548_v20 = vpop.f32.mrf.mxu1 }
 0x6f0   :  { %v1525_v50 = vpop.f32.mrf.mxu2 }
 0x6f1   :  { %v3428_v38 = vadd.f32 %v1548_v20, %v1525_v50 }
 0x6f8   :  { %v1528_v13 = vpop.f32.mrf.mxu2  ;;  %v1571_v21 = vpop.f32.mrf.mxu0 }
 0x6fe   :  { %v1594_v3 = vpop.f32.mrf.mxu1 }
 0x6ff   :  { %v3430_v30 = vadd.f32 %v1594_v3, %v1571_v21 }
 0x700   :  { %v1551_v25 = vpop.f32.mrf.mxu2  ;;  %v1574_v61 = vpop.f32.mrf.mxu0 }
 0x701   :  { %v1700_v62 = vadd.f32 %v3430_v30, %v3428_v38  ;;  %v3434_v29 = vadd.f32 %v1551_v25, %v1528_v13 }
 0x703   :  { %1701 = vadd.xlane.f32.xlu2 %v1700_v62 }
 0x706   :  { %v1597_v4 = vpop.f32.mrf.mxu1 }
 0x707   :  { %v3436_v47 = vadd.f32 %v1597_v4, %v1574_v61 }
 0x709   :  { %v1703_v0 = vadd.f32 %v3436_v47, %v3434_v29 }
 0x70b   :  { %1704 = vadd.xlane.f32.xlu0 %v1703_v0 }
 0x71b   :  { %1394 = vrot.lane.b32.xlu2 %v3054_v41, %s2219_s5 }
 0x71f   :  { %1030 = vrot.lane.b32.xlu0 %v3067_v31, %s2218_s23 }
 0x776   :  { %v1702_v6 = vpop.xlane.xlu2 %1701 }
 0x777   :  { %v1706_v2 = vsel %vm869_vm9, %v1702_v6, 0.0 }
 0x77e   :  { %v1705_v11 = vpop.xlane.xlu0 %1704  ;;  %v1395_v35 = vpop.permute.xlu2 %1394 }
 0x77f   :  { %v1707_v39 = vsel %vm869_vm9, %v1705_v11, 0.0  ;;  %v1397_v41 = vsel %vm556_vm7, %v3274_v34, %v1395_v35  ;;  %v1403_v31 = vsel %vm556_vm7, %v1395_v35, %v3032_v8 }
 0x780   :  { %v1420_v24 = vmul.f32 %v1408_v36, %v1397_v41  ;;  %v1421_v28 = vmul.f32 %v1409_v26, %v1403_v31  ;;  %v1708_v7 = vadd.f32 %v1707_v39, %v1706_v2 }
 0x782   :  { %1709 = vadd.xlane.f32.xlu0 %v1708_v7  ;;  %1637 = vmatpush.msrb.mxu2 %v1420_v24 }
 0x783   :  { %1683 = vmatpush.msrb.mxu0 %v1421_v28 }
 0x784   :  { %1638 = vmatpush.msrb.mxu2 %v1416_v23 }
 0x785   :  { %1684 = vmatpush.msrb.mxu0 %v1417_v15  ;;  %1905 = vmatmul.msk.f32.vlgmr.msrb.gmra.mxu2 %vm664_vm8, %v3296_v54 }
 0x786   :  { %1907 = vmatmul.msk.f32.vlgmr.msrb.gmra.mxu0 %vm664_vm8, %v3296_v54 }
 0x78d   :  { %1906 = vmatmul.msk.f32.gmra.mxu2 %vm664_vm8, %v3323_v10 }
 0x791   :  { %v1031_v8 = vpop.permute.xlu0 %1030 }
 0x792   :  { %v1038_v46 = vsel %vm185_vm6, %v1031_v8, %v3228_v53  ;;  %v1040_v34 = vsel %vm185_vm6, %v3194_v18, %v1031_v8 }
 0x793   :  { %v1058_v45 = vmul.f32 %v1050_v56, %v1040_v34  ;;  %v1059_v19 = vmul.f32 %v1051_v16, %v1038_v46 }
 0x795   :  { %1615 = vmatpush.msrb.mxu3 %v1058_v45  ;;  %1661 = vmatpush.msra.mxu1 %v1059_v19 }
 0x796   :  { %1662 = vmatmul.f32.vlgmr.msra.gmra.mxu1 %v3281_v5  ;;  %1616 = vmatmul.f32.vlgmr.msrb.gmra.mxu3 %v3281_v5 }
 0x797   :  { %1911 = vmatpush.msra.mxu3 %v1421_v28 }
 0x799   :  { %1912 = vmatpush.msra.mxu3 %v1417_v15 }
 0x79e   :  { %1665 = vmatmul.f32.gmra.mxu1 %v3300_v51  ;;  %1619 = vmatmul.f32.gmra.mxu3 %v3300_v51 }
 0x7a6   :  { %1908 = vmatmul.msk.f32.vlgmr.msra.gmra.mxu3 %vm664_vm8, %v3323_v10 }
 0x7f5   :  { %v1710_v53 = vpop.xlane.xlu0 %1709 }
 0x7f6   :  { %v1711_v12 = vrot.slane %v1710_v53, 4 }
 0x7f8   :  { %v1712_v18 = vadd.f32 %v1711_v12, %v1710_v53  ;;  %v3514_v53 = vld [vmem:[#allocation12] sm:$0xff]  ;;  %v3516_v12 = vld [vmem:[#allocation12 + $0x8] sm:$0xff] }
 0x7fa   :  { %v1713_v54 = vrot.slane %v1712_v18, 2 }
 0x7fc   :  { %v1714_v33 = vadd.f32 %v1713_v54, %v1712_v18  ;;  %v3518_v18 = vld [vmem:[#allocation12 + $0x10] sm:$0xff]  ;;  %v3520_v54 = vld [vmem:[#allocation12 + $0x18] sm:$0xff] }
 0x7fe   :  { %v1715_v32 = vrot.slane %v1714_v33, 1 }
 0x800   :  { %v1716_v17 = vadd.f32 %v1715_v32, %v1714_v33  ;;  %v3522_v32 = vld [vmem:[#allocation14] sm:$0xff] }
 0x802   :  { %1925 = vpush %v1716_v17 }
 0x803   :  { %v1686_v1 = vpop.f32.mrf.mxu0 }
 0x808   :  { %v1640_v49 = vpop.f32.mrf.mxu2 }
 0x810   :  { %v1643_v44 = vpop.f32.mrf.mxu2 }
 0x813   :  { %v1663_v5 = vpop.f32.mrf.mxu1 }
 0x814   :  { %v3480_v55 = vadd.f32 %v1686_v1, %v1663_v5  ;;  %v3528_v5 = vld [vmem:[#allocation14 + $0x8] sm:$0xff] }
 0x819   :  { %v1617_v42 = vpop.f32.mrf.mxu3 }
 0x81a   :  { %v3478_v63 = vadd.f32 %v1640_v49, %v1617_v42 }
 0x81b   :  { %v1666_v58 = vpop.f32.mrf.mxu1 }
 0x81c   :  { %v1773_v51 = vadd.f32 %v3480_v55, %v3478_v63 }
 0x81e   :  { %1774 = vadd.xlane.f32.xlu0 %v1773_v51  ;;  %v3530_v51 = vld [vmem:[#allocation14 + $0x10] sm:$0xff] }
 0x821   :  { %v1620_v10 = vpop.f32.mrf.mxu3 }
 0x822   :  { %v3504_v20 = vadd.f32 %v1643_v44, %v1620_v10  ;;  %v3532_v10 = vld [vmem:[#allocation14 + $0x18] sm:$0xff] }
 0x829   :  { %v1689_v43 = vpop.f32.mrf.mxu3 }
 0x82a   :  { %v3506_v13 = vadd.f32 %v1689_v43, %v1666_v58 }
 0x82c   :  { %v1776_v21 = vadd.f32 %v3506_v13, %v3504_v20 }
 0x833   :  { %s1926_s14 = spop %1925 }
 0x834   :  { %s1718_s17 = smul.f32 0.00024414063, %s1926_s14 }
 0x836   :  { %v1719_v57 = vstv %s1718_s17 }
 0x837   :  { %v3485_v48 = vsub.f32 %v3428_v38, %v1719_v57  ;;  %v3488_v22 = vsub.f32 %v3430_v30, %v1719_v57  ;;  %v3491_v37 = vsub.f32 %v3434_v29, %v1719_v57  ;;  %v3494_v52 = vsub.f32 %v3436_v47, %v1719_v57 }
 0x839   :  { %v1726_v27 = vmul.f32 %v3491_v37, %v3491_v37  ;;  %v1727_v56 = vmul.f32 %v3494_v52, %v3494_v52  ;;  %v1724_v16 = vmul.f32 %v3485_v48, %v3485_v48  ;;  %v1725_v9 = vmul.f32 %v3488_v22, %v3488_v22 }
 0x83b   :  { %v1731_v40 = vadd.f32 %v1727_v56, %v1726_v27  ;;  %v1728_v50 = vadd.f32 %v1725_v9, %v1724_v16 }
 0x83d   :  { %1732 = vadd.xlane.f32.xlu1 %v1731_v40  ;;  %1729 = vadd.xlane.f32.xlu2 %v1728_v50  ;;  %v1965_v50 = vld [vmem:[#allocation3] sm:$0xff] }
 0x845   :  { %1777 = vadd.xlane.f32.xlu1 %v1776_v21 }
 0x891   :  { %v1775_v61 = vpop.xlane.xlu0 %1774 }
 0x892   :  { %v1779_v4 = vsel %vm869_vm9, %v1775_v61, 0.0 }
 0x8b0   :  { %v1733_v3 = vpop.xlane.xlu1 %1732  ;;  %v1730_v38 = vpop.xlane.xlu2 %1729 }
 0x8b1   :  { %v1735_v30 = vsel %vm869_vm9, %v1733_v3, 0.0  ;;  %v1734_v62 = vsel %vm869_vm9, %v1730_v38, 0.0  ;;  %v1966_v3 = vld [vmem:[#allocation3 + $0x8] sm:$0xff] }
 0x8b2   :  { %v1736_v25 = vadd.f32 %v1735_v30, %v1734_v62  ;;  %v1967_v30 = vld [vmem:[#allocation3 + $0x20] sm:$0xff] }
 0x8b4   :  { %1737 = vadd.xlane.f32.xlu2 %v1736_v25  ;;  %v1968_v25 = vld [vmem:[#allocation3 + $0x28] sm:$0xff] }
 0x8b8   :  { %v1778_v29 = vpop.xlane.xlu1 %1777 }
 0x8b9   :  { %v1780_v47 = vsel %vm869_vm9, %v1778_v29, 0.0 }
 0x8ba   :  { %v1781_v0 = vadd.f32 %v1780_v47, %v1779_v4 }
 0x8bc   :  { %1782 = vadd.xlane.f32.xlu2 %v1781_v0 }
 0x927   :  { %v1738_v6 = vpop.xlane.xlu2 %1737 }
 0x928   :  { %v1739_v14 = vrot.slane %v1738_v6, 4 }
 0x92a   :  { %v1740_v36 = vadd.f32 %v1739_v14, %v1738_v6 }
 0x92c   :  { %v1741_v26 = vrot.slane %v1740_v36, 2 }
 0x92e   :  { %v1742_v59 = vadd.f32 %v1741_v26, %v1740_v36 }
 0x92f   :  { %v1783_v2 = vpop.xlane.xlu2 %1782 }
 0x930   :  { %v1743_v11 = vrot.slane %v1742_v59, 1  ;;  %v1784_v39 = vrot.slane %v1783_v2, 4 }
 0x932   :  { %v1744_v35 = vadd.f32 %v1743_v11, %v1742_v59  ;;  %v1785_v31 = vadd.f32 %v1784_v39, %v1783_v2 }
 0x934   :  { %1927 = vpush %v1744_v35  ;;  %v1786_v60 = vrot.slane %v1785_v31, 2 }
 0x936   :  { %v1787_v23 = vadd.f32 %v1786_v60, %v1785_v31 }
 0x938   :  { %v1788_v46 = vrot.slane %v1787_v23, 1 }
 0x93a   :  { %v1789_v19 = vadd.f32 %v1788_v46, %v1787_v23 }
 0x965   :  { %s1928_s2 = spop %1927 }
 0x966   :  { %s1746_s1 = smul.f32 0.00024414063, %s1928_s2 }
 0x968   :  { %s1747_s4 = sadd.f32 1e-05, %s1746_s1 }
 0x96a   :  { %v1748_v41 = vstv %s1747_s4 }
 0x96b   :  { %1961 = vrsqrt.f32 %v1748_v41  ;;  %vm1755_vm1 = vweird.f32 %v1748_v41 }
 0x971   :  { %v1962_v24 = vpop.eup %1961 }
 0x972   :  { %v1750_v28 = vmul.f32 %v1962_v24, %v1748_v41  ;;  %vm1756_vm0 = vweird.f32 %v1962_v24 }
 0x973   :  { %vm1757_vm2 = vmor %vm1755_vm1, %vm1756_vm0 }
 0x974   :  { %v1751_v7 = vmul.f32 %v1962_v24, %v1750_v28 }
 0x976   :  { %v1752_v15 = vmul.f32 0.5, %v1751_v7 }
 0x978   :  { %v1753_v8 = vsub.f32 1.5, %v1752_v15 }
 0x97a   :  { %v1754_v34 = vmul.f32 %v1962_v24, %v1753_v8 }
 0x97c   :  { %v1758_v45 = vsel %vm1757_vm2, %v1962_v24, %v1754_v34 }
 0x97d   :  { %1929 = vpush %v1758_v45 }
 0x97e   :  { %1931 = vpush %v1789_v19 }
 0x9ae   :  { %s1930_s18 = spop %1929 }
 0x9af   :  { %v1760_v33 = vstv %s1930_s18  ;;  %s1932_s3 = spop %1931 }
 0x9b0   :  { %v1761_v17 = vmul.f32 %v1760_v33, %v3485_v48  ;;  %v1762_v1 = vmul.f32 %v1760_v33, %v3488_v22  ;;  %v1763_v42 = vmul.f32 %v1760_v33, %v3491_v37  ;;  %v1764_v49 = vmul.f32 %v1760_v33, %v3494_v52  ;;  %s1791_s19 = smul.f32 0.00024414063, %s1932_s3 }
 0x9b2   :  { %v1765_v57 = vmul.f32 %v1761_v17, %v3514_v53  ;;  %v1766_v27 = vmul.f32 %v1762_v1, %v3516_v12  ;;  %v1767_v56 = vmul.f32 %v1763_v42, %v3518_v18  ;;  %v1768_v48 = vmul.f32 %v1764_v49, %v3520_v54 }
 0x9b3   :  { %v1792_v22 = vstv %s1791_s19 }
 0x9b4   :  { %v1769_v37 = vadd.f32 %v1765_v57, %v3522_v32  ;;  %v1770_v52 = vadd.f32 %v1766_v27, %v3528_v5  ;;  %v1771_v16 = vadd.f32 %v1767_v56, %v3530_v51  ;;  %v1772_v9 = vadd.f32 %v1768_v48, %v3532_v10 }
 0x9b5   :  { %v1793_v44 = vsub.f32 %v3478_v63, %v1792_v22  ;;  %v1794_v58 = vsub.f32 %v3480_v55, %v1792_v22  ;;  %v1795_v43 = vsub.f32 %v3504_v20, %v1792_v22  ;;  %v1796_v40 = vsub.f32 %v3506_v13, %v1792_v22 }
 0x9b6   :  { %v1846_v21 = vadd.f32 %v1965_v50, %v1769_v37  ;;  %v1847_v38 = vadd.f32 %v1966_v3, %v1770_v52  ;;  %v1850_v62 = vadd.f32 %v1967_v30, %v1771_v16  ;;  %v1851_v61 = vadd.f32 %v1968_v25, %v1772_v9  ;;  %v1969_v9 = vld [vmem:[#allocation3 + $0x10] sm:$0xff]  ;;  %v1972_v50 = vld [vmem:[#allocation3 + $0x38] sm:$0xff] }
 0x9b7   :  { %v1799_v4 = vmul.f32 %v1795_v43, %v1795_v43  ;;  %v1800_v29 = vmul.f32 %v1796_v40, %v1796_v40  ;;  %v1797_v47 = vmul.f32 %v1793_v44, %v1793_v44  ;;  %v1798_v0 = vmul.f32 %v1794_v58, %v1794_v58 }
 0x9b8   :  { %v1854_v6 = vmax.f32 %v1846_v21, 0.0  ;;  %v1855_v63 = vmax.f32 %v1847_v38, 0.0  ;;  %v1858_v14 = vmax.f32 %v1850_v62, 0.0  ;;  %v1859_v55 = vmax.f32 %v1851_v61, 0.0 }
 0x9b9   :  { %v1804_v36 = vadd.f32 %v1800_v29, %v1799_v4  ;;  %v1801_v20 = vadd.f32 %v1798_v0, %v1797_v47 }
 0x9ba   :  { %1862 = vst [vmem:[#allocation17] sm:$0xff] %v1854_v6 }
 0x9bb   :  { %1863 = vst [vmem:[#allocation17 + $0x8] sm:$0xff] %v1855_v63  ;;  %1805 = vadd.xlane.f32.xlu1 %v1804_v36  ;;  %1802 = vadd.xlane.f32.xlu0 %v1801_v20 }
 0x9bc   :  { %1866 = vst [vmem:[#allocation17 + $0x20] sm:$0xff] %v1858_v14 }
 0x9bd   :  { %1867 = vst [vmem:[#allocation17 + $0x28] sm:$0xff] %v1859_v55 }
 0xa2e   :  { %v1806_v13 = vpop.xlane.xlu1 %1805  ;;  %v1803_v26 = vpop.xlane.xlu0 %1802 }
 0xa2f   :  { %v1808_v59 = vsel %vm869_vm9, %v1806_v13, 0.0  ;;  %v1807_v11 = vsel %vm869_vm9, %v1803_v26, 0.0 }
 0xa30   :  { %v1809_v35 = vadd.f32 %v1808_v59, %v1807_v11 }
 0xa32   :  { %1810 = vadd.xlane.f32.xlu2 %v1809_v35 }
 0xaa5   :  { %v1811_v2 = vpop.xlane.xlu2 %1810 }
 0xaa6   :  { %v1812_v39 = vrot.slane %v1811_v2, 4 }
 0xaa8   :  { %v1813_v41 = vadd.f32 %v1812_v39, %v1811_v2 }
 0xaaa   :  { %v1814_v31 = vrot.slane %v1813_v41, 2 }
 0xaac   :  { %v1815_v60 = vadd.f32 %v1814_v31, %v1813_v41 }
 0xaae   :  { %v1816_v24 = vrot.slane %v1815_v60, 1 }
 0xab0   :  { %v1817_v28 = vadd.f32 %v1816_v24, %v1815_v60 }
 0xab2   :  { %1933 = vpush %v1817_v28 }
 0xae3   :  { %s1934_s6 = spop %1933 }
 0xae4   :  { %s1819_s7 = smul.f32 0.00024414063, %s1934_s6 }
 0xae6   :  { %s1820_s13 = sadd.f32 1e-05, %s1819_s7 }
 0xae8   :  { %v1821_v7 = vstv %s1820_s13 }
 0xae9   :  { %1963 = vrsqrt.f32 %v1821_v7  ;;  %vm1828_vm4 = vweird.f32 %v1821_v7 }
 0xaef   :  { %v1964_v23 = vpop.eup %1963 }
 0xaf0   :  { %v1823_v15 = vmul.f32 %v1964_v23, %v1821_v7  ;;  %vm1829_vm3 = vweird.f32 %v1964_v23 }
 0xaf1   :  { %vm1830_vm5 = vmor %vm1828_vm4, %vm1829_vm3 }
 0xaf2   :  { %v1824_v8 = vmul.f32 %v1964_v23, %v1823_v15 }
 0xaf4   :  { %v1825_v46 = vmul.f32 0.5, %v1824_v8 }
 0xaf6   :  { %v1826_v34 = vsub.f32 1.5, %v1825_v46 }
 0xaf8   :  { %v1827_v45 = vmul.f32 %v1964_v23, %v1826_v34 }
 0xafa   :  { %v1831_v19 = vsel %vm1830_vm5, %v1964_v23, %v1827_v45 }
 0xafb   :  { %1935 = vpush %v1831_v19 }
 0xb2c   :  { %s1936_s20 = spop %1935 }
 0xb2d   :  { %v1833_v33 = vstv %s1936_s20 }
 0xb2e   :  { %v1834_v17 = vmul.f32 %v1833_v33, %v1793_v44  ;;  %v1835_v1 = vmul.f32 %v1833_v33, %v1794_v58  ;;  %v1836_v42 = vmul.f32 %v1833_v33, %v1795_v43  ;;  %v1837_v49 = vmul.f32 %v1833_v33, %v1796_v40  ;;  %v1970_v58 = vld [vmem:[#allocation3 + $0x18] sm:$0xff]  ;;  %v1971_v40 = vld [vmem:[#allocation3 + $0x30] sm:$0xff] }
 0xb30   :  { %v1838_v57 = vmul.f32 %v1834_v17, %v3514_v53  ;;  %v1839_v27 = vmul.f32 %v1835_v1, %v3516_v12  ;;  %v1840_v56 = vmul.f32 %v1836_v42, %v3518_v18  ;;  %v1841_v48 = vmul.f32 %v1837_v49, %v3520_v54 }
 0xb32   :  { %v1842_v22 = vadd.f32 %v1838_v57, %v3522_v32  ;;  %v1843_v37 = vadd.f32 %v1839_v27, %v3528_v5  ;;  %v1844_v52 = vadd.f32 %v1840_v56, %v3530_v51  ;;  %v1845_v16 = vadd.f32 %v1841_v48, %v3532_v10 }
 0xb34   :  { %v1848_v44 = vadd.f32 %v1969_v9, %v1842_v22  ;;  %v1849_v43 = vadd.f32 %v1970_v58, %v1843_v37  ;;  %v1852_v53 = vadd.f32 %v1971_v40, %v1844_v52  ;;  %v1853_v12 = vadd.f32 %v1972_v50, %v1845_v16 }
 0xb36   :  { %v1856_v21 = vmax.f32 %v1848_v44, 0.0  ;;  %v1857_v18 = vmax.f32 %v1849_v43, 0.0  ;;  %v1860_v3 = vmax.f32 %v1852_v53, 0.0  ;;  %v1861_v54 = vmax.f32 %v1853_v12, 0.0 }
 0xb38   :  { %1864 = vst [vmem:[#allocation17 + $0x10] sm:$0xff] %v1856_v21 }
 0xb39   :  { %1865 = vst [vmem:[#allocation17 + $0x18] sm:$0xff] %v1857_v18 }
 0xb3a   :  { %1868 = vst [vmem:[#allocation17 + $0x30] sm:$0xff] %v1860_v3 }
 0xb3b   :  { %1869 = vst [vmem:[#allocation17 + $0x38] sm:$0xff] %v1861_v54 }
 0xb3c   :  { %1882 = dma.vmem_to_hbm [thread:$0]  %s1875_s22, 1024, %s1877_s26, [#allocation5], %s2207_s24, %s2207_s24, %s2208_s25  }
 0xb3d   :  { %2199 = dma.done.wait [#allocation5], 1024  }
 0xb3e   :  { %2200 = vsyncadd [#allocation5], 4294966272 }
 0xb3f   :  { %1887 = vsyncpa [#allocation4], 1 }
 0xb40   :  { %1888 = vsyncpa [#allocation7], 1 }
 0xb41   :  { %1889 = vsyncpa [#allocation10], 1 }
 0xb42   :  { %1890 = vsyncpa [#allocation13], 1 }
 0xb43   :  { %1891 = vsyncpa [#allocation16], 1 }
 0xb44   :  { %1892 = vsyncpa [#allocation5], 1 }

</bundles_post_ra>
